<compile_context>
chip_gen: v5e
topology: v5e:2x2
jax: 0.10.0
libtpu: 0.0.40
codegen_flags: <defaults>
</compile_context>

<pallas_src>
import functools

import jax
import jax.numpy as jnp
import numpy as np
from jax import lax
from jax.experimental import pallas as pl
from jax.experimental.pallas import tpu as pltpu

START_TAG = "<start>"
STOP_TAG = "<stop>"


def _make_viterbi_kernel(start_idx: int, T: int, S: int, b_tile: int):
    num_steps = T - 1
    fwd_unroll = num_steps if num_steps <= 8 else 8
    tb_unroll = max(1, (num_steps - 1) if (num_steps - 1) <= 8 else 8)

    def kernel(trans_ref, logits_ref, masks_ref, score_ref, path_ref, bp_ref):
        NEG = jnp.float32(-10000.0)

        # ---- loop-invariant values, hoisted out of the time loop -------------------
        trans = trans_ref[...].astype(jnp.float32)                     # (S_next, S_prev)
        # transitions[:, p] broadcast across the lane (batch) axis -> (S_next, B_tile).
        trans_cols = [
            jnp.broadcast_to(trans[:, p:p + 1], (S, b_tile)) for p in range(S)
        ]
        sub_iota = lax.broadcasted_iota(jnp.int32, (S, b_tile), 0)     # tag id per sublane
        zeros_idx = jnp.zeros((S, b_tile), jnp.int32)

        # Initial forward_var: 0 at <start>, -10000 elsewhere.  Tags on sublanes.
        fv0 = jnp.where(sub_iota == start_idx, jnp.float32(0.0), NEG)  # (S, B_tile)

        # ---- forward pass -----------------------------------------------------------
        def fwd_body(t, carry):
            fv, _ = carry
            i = t + 1
            feat = (logits_ref[i].astype(jnp.float32)
                    * masks_ref[pl.ds(i, 1), :].astype(jnp.float32))   # (S,B) * (1,B)
            # Fused max + first-occurrence argmax over prev tags: running elementwise
            # maximum over the S candidates (strict '>' keeps the first occurrence).
            best_val = jnp.broadcast_to(fv[0:1, :], (S, b_tile)) + trans_cols[0]
            best_idx = zeros_idx
            for p in range(1, S):
                cand = jnp.broadcast_to(fv[p:p + 1, :], (S, b_tile)) + trans_cols[p]
                take = cand > best_val
                best_idx = jnp.where(take, jnp.int32(p), best_idx)
                best_val = jnp.maximum(best_val, cand)
            bp_ref[t] = best_idx
            # PyTorch quirk: path_score comes from the LAST next_tag (S-1) of the LAST
            # timestep, before adding the emission.  Carry it; store once after the loop.
            return best_val + feat, best_val[S - 1:S, :]

        _, final_score = lax.fori_loop(
            0, num_steps, fwd_body, (fv0, fv0[S - 1:S, :]), unroll=fwd_unroll)
        score_ref[...] = final_score                                   # single store

        # ---- traceback ----------------------------------------------------------------
        b0 = bp_ref[num_steps - 1][S - 1:S, :]                         # (1, B_tile)
        path_ref[pl.ds(num_steps - 1, 1), :] = b0

        def tb_body(m, cur):
            k = num_steps - 1 - m
            bp_k = bp_ref[k]                                           # (S, B_tile)
            # Pure-VPU select chain (serial/latency-bound path: avoid XLU reductions).
            cur_new = bp_k[0:1, :]
            for p in range(1, S):
                cur_new = jnp.where(cur == jnp.int32(p), bp_k[p:p + 1, :], cur_new)
            path_ref[pl.ds(k - 1, 1), :] = cur_new
            return cur_new

        lax.fori_loop(0, num_steps - 1, tb_body, b0, unroll=tb_unroll)
        # TODO(synk): the torch code asserts the final traced-back tag equals <start>;
        #             in-kernel asserts are skipped (holds by construction of transitions).

    return kernel


@functools.partial(jax.jit, static_argnums=(3,),
                   static_argnames=("b_tile", "input_dtype"))
def crf_viterbi_decode(transitions, logits, masks, start_idx, *,
                       b_tile=128, input_dtype=jnp.float32):
    """logits: (B,T,S), masks: (B,T), transitions[next,prev]: (S,S).
    Returns (path_score (B,) f32, best_path (B,T-1) i32), matching CRF._viterbi_decode.
    input_dtype=jnp.bfloat16 halves logits/masks HBM bytes (forward_var stays f32)."""
    B, T, S = logits.shape
    assert T >= 2, "need at least 2 timesteps"
    num_steps = T - 1

    # Batch-on-lanes layout.  These transposes (and the pad below) are allowed to fuse
    # into the pallas_call input DMA via allow_input_fusion, so they do not double the
    # HBM traffic of the dominant logits stream.
    logits_t = jnp.transpose(logits.astype(input_dtype), (1, 2, 0))    # (T, S, B)
    masks_t = jnp.transpose(masks.astype(input_dtype), (1, 0))         # (T, B)
    transitions = transitions.astype(jnp.float32)

    # Pad batch to a multiple of the lane tile so all stores are lane-dense and the
    # batch grid axis has >= 1 full 128-lane block (multiple blocks -> megacore on v7x).
    pad = (-B) % b_tile
    if pad:
        logits_t = jnp.pad(logits_t, ((0, 0), (0, 0), (0, pad)))
        masks_t = jnp.pad(masks_t, ((0, 0), (0, pad)))
    B_pad = B + pad
    n_b = B_pad // b_tile

    kernel = _make_viterbi_kernel(start_idx, T, S, b_tile)

    # Per-block VMEM footprint (double-buffered inputs/outputs + backpointer scratch).
    in_bytes = jnp.dtype(input_dtype).itemsize
    est = (2 * T * S * b_tile * in_bytes            # logits block x2
           + 2 * T * b_tile * in_bytes              # masks block x2
           + num_steps * S * b_tile * 4             # backpointer scratch
           + 2 * (num_steps + 1) * b_tile * 4       # score + path outputs x2
           + 2 * S * S * 4)                         # transitions x2
    vmem_limit = int(min(100 << 20, max(32 << 20, 2 * est)))
    # TODO(synk): for very long T (VMEM-bound, esp. v7x 64 MiB), chunk the time axis with
    #             an inner pltpu.emit_pipeline carrying forward_var in VMEM scratch.

    grid_spec = pltpu.PrefetchScalarGridSpec(
        num_scalar_prefetch=0,
        grid=(n_b,),
        in_specs=[
            pl.BlockSpec((S, S), lambda b: (0, 0)),                  # transitions
            pl.BlockSpec((T, S, b_tile), lambda b: (0, 0, b)),       # logits (T,S,B)
            pl.BlockSpec((T, b_tile), lambda b: (0, b)),             # masks  (T,B)
        ],
        out_specs=[
            pl.BlockSpec((1, b_tile), lambda b: (0, b)),             # score (1,B)
            pl.BlockSpec((num_steps, b_tile), lambda b: (0, b)),     # path  (T-1,B)
        ],
        scratch_shapes=[pltpu.VMEM((num_steps, S, b_tile), jnp.int32)],
    )

    score_t, path_t = pl.pallas_call(
        kernel,
        out_shape=(
            jax.ShapeDtypeStruct((1, B_pad), jnp.float32),
            jax.ShapeDtypeStruct((num_steps, B_pad), jnp.int32),
        ),
        grid_spec=grid_spec,
        compiler_params=pltpu.CompilerParams(
            dimension_semantics=("parallel",),
            allow_input_fusion=[False, True, True],
            vmem_limit_bytes=vmem_limit,
        ),
    )(transitions, logits_t, masks_t)

    # Slice the batch padding back off; back to PyTorch (B,) / (B, T-1) convention.
    return score_t[0, :B], jnp.transpose(path_t[:, :B], (1, 0))


def viterbi_reference(transitions, logits, masks, start_idx):
    """Pure numpy transliteration of CRF._viterbi_decode for verification."""
    trans = np.asarray(transitions, np.float32)
    feats = np.asarray(logits, np.float32)
    masks = np.asarray(masks, np.float32)
    B, T, S = feats.shape
    forward_var = np.full((B, S), -10000.0, np.float32)
    forward_var[:, start_idx] = 0.0
    backpointers = []
    last_nt_var = None
    last_best = None
    for i in range(1, T):
        feat = feats[:, i, :] * masks[:, i:i + 1]
        bptrs = np.zeros((B, S), np.int32)
        vits = np.zeros((B, S), np.float32)
        for nt in range(S):
            nt_var = forward_var + trans[nt][None, :]
            best = np.argmax(nt_var, axis=1)
            bptrs[:, nt] = best
            vits[:, nt] = nt_var[np.arange(B), best]
            last_nt_var, last_best = nt_var, best
        backpointers.append(bptrs)
        forward_var = vits + feat
    path_score = last_nt_var[np.arange(B), last_best]
    best_path = [last_best.astype(np.int32)]
    best_tag = last_best
    for bptrs in reversed(backpointers):
        best_tag = bptrs[np.arange(B), best_tag]
        best_path.append(best_tag.astype(np.int32))
    start = best_path.pop()
    assert np.all(start == start_idx)
    best_path.reverse()
    return path_score, np.stack(best_path, axis=1)


if __name__ == "__main__":
    slot2idx = {"O": 0, "B-loc": 1, "I-loc": 2, "B-per": 3, "I-per": 4, "B-org": 5,
                START_TAG: 6, STOP_TAG: 7}
    S = len(slot2idx)            # 8 tags (incl. <start>/<stop>)
    B, T = 2, 8
    start_idx = slot2idx[START_TAG]
    stop_idx = slot2idx[STOP_TAG]

    key = jax.random.PRNGKey(0)
    k_trans, k_logits = jax.random.split(key)

    # Deterministic parameter init mirroring nn.Parameter(randn) + the constraint rows.
    transitions = jax.random.normal(k_trans, (S, S), jnp.float32)
    transitions = transitions.at[start_idx, :].set(-10000.0)
    transitions = transitions.at[:, stop_idx].set(-10000.0)

    logits = jax.random.normal(k_logits, (B, T, S), jnp.float32)
    masks = jnp.ones((B, T), jnp.float32)
    masks = masks.at[1, T - 2:].set(0.0)   # ragged second sequence

    score, best_path = crf_viterbi_decode(transitions, logits, masks, start_idx)
    score = jax.block_until_ready(score)
    best_path = jax.block_until_ready(best_path)

    ref_score, ref_path = viterbi_reference(transitions, logits, masks, start_idx)
    np.testing.assert_allclose(np.asarray(score), ref_score, rtol=1e-5, atol=1e-4)
    np.testing.assert_array_equal(np.asarray(best_path), ref_path)
    print("KERNEL_OK")
</pallas_src>

<mosaic_0001>
module attributes {stable_mosaic.version = 11 : i64} {
  func.func @kernel(%arg0: i32, %arg1: memref<8x8xf32, #tpu.memory_space<vmem>>, %arg2: memref<8x8x128xf32, #tpu.memory_space<vmem>>, %arg3: memref<8x128xf32, #tpu.memory_space<vmem>>, %arg4: memref<1x128xf32, #tpu.memory_space<vmem>>, %arg5: memref<7x128xi32, #tpu.memory_space<vmem>>, %arg6: memref<7x8x128xi32, #tpu.memory_space<vmem>>) attributes {dimension_semantics = [#tpu.dimension_semantics<parallel>], iteration_bounds = array<i64: 1>, scalar_prefetch = 0 : i64, scratch_operands = 1 : i64, tpu.core_type = #tpu.core_type<tc>, window_params = [{pipeline_mode = #tpu.pipeline_mode<synchronous>, transform_indices = @transform_0, window_bounds = array<i64: 8, 8>}, {transform_indices = @transform_1, window_bounds = array<i64: 8, 8, 128>}, {transform_indices = @transform_2, window_bounds = array<i64: 8, 128>}, {transform_indices = @transform_3, window_bounds = array<i64: 1, 128>}, {transform_indices = @transform_4, window_bounds = array<i64: 7, 128>}]} {
    %c0 = arith.constant 0 : index
    %c0_0 = arith.constant 0 : index
    %0 = vector.load %arg1[%c0, %c0_0] : memref<8x8xf32, #tpu.memory_space<vmem>>, vector<8x8xf32>
    %1 = vector.extract_strided_slice %0 {offsets = [0, 0], sizes = [8, 1], strides = [1, 1]} : vector<8x8xf32> to vector<8x1xf32>
    %2 = vector.shape_cast %1 : vector<8x1xf32> to vector<8x1xf32>
    %3 = vector.broadcast %2 : vector<8x1xf32> to vector<8x128xf32>
    %4 = vector.extract_strided_slice %0 {offsets = [0, 1], sizes = [8, 1], strides = [1, 1]} : vector<8x8xf32> to vector<8x1xf32>
    %5 = vector.shape_cast %4 : vector<8x1xf32> to vector<8x1xf32>
    %6 = vector.broadcast %5 : vector<8x1xf32> to vector<8x128xf32>
    %7 = vector.extract_strided_slice %0 {offsets = [0, 2], sizes = [8, 1], strides = [1, 1]} : vector<8x8xf32> to vector<8x1xf32>
    %8 = vector.shape_cast %7 : vector<8x1xf32> to vector<8x1xf32>
    %9 = vector.broadcast %8 : vector<8x1xf32> to vector<8x128xf32>
    %10 = vector.extract_strided_slice %0 {offsets = [0, 3], sizes = [8, 1], strides = [1, 1]} : vector<8x8xf32> to vector<8x1xf32>
    %11 = vector.shape_cast %10 : vector<8x1xf32> to vector<8x1xf32>
    %12 = vector.broadcast %11 : vector<8x1xf32> to vector<8x128xf32>
    %13 = vector.extract_strided_slice %0 {offsets = [0, 4], sizes = [8, 1], strides = [1, 1]} : vector<8x8xf32> to vector<8x1xf32>
    %14 = vector.shape_cast %13 : vector<8x1xf32> to vector<8x1xf32>
    %15 = vector.broadcast %14 : vector<8x1xf32> to vector<8x128xf32>
    %16 = vector.extract_strided_slice %0 {offsets = [0, 5], sizes = [8, 1], strides = [1, 1]} : vector<8x8xf32> to vector<8x1xf32>
    %17 = vector.shape_cast %16 : vector<8x1xf32> to vector<8x1xf32>
    %18 = vector.broadcast %17 : vector<8x1xf32> to vector<8x128xf32>
    %19 = vector.extract_strided_slice %0 {offsets = [0, 6], sizes = [8, 1], strides = [1, 1]} : vector<8x8xf32> to vector<8x1xf32>
    %20 = vector.shape_cast %19 : vector<8x1xf32> to vector<8x1xf32>
    %21 = vector.broadcast %20 : vector<8x1xf32> to vector<8x128xf32>
    %22 = vector.extract_strided_slice %0 {offsets = [0, 7], sizes = [8, 1], strides = [1, 1]} : vector<8x8xf32> to vector<8x1xf32>
    %23 = vector.shape_cast %22 : vector<8x1xf32> to vector<8x1xf32>
    %24 = vector.broadcast %23 : vector<8x1xf32> to vector<8x128xf32>
    %25 = tpu.iota {dimensions = array<i32: 0>} : vector<8x128xi32>
    %c0_i32 = arith.constant 0 : i32
    %26 = vector.broadcast %c0_i32 : i32 to vector<8x128xi32>
    %c6_i32 = arith.constant 6 : i32
    %27 = vector.broadcast %c6_i32 : i32 to vector<8x128xi32>
    %28 = arith.cmpi eq, %25, %27 : vector<8x128xi32>
    %cst = arith.constant 0.000000e+00 : f32
    %cst_1 = arith.constant -1.000000e+04 : f32
    %29 = vector.broadcast %cst : f32 to vector<8x128xf32>
    %30 = vector.broadcast %cst_1 : f32 to vector<8x128xf32>
    %31 = arith.select %28, %29, %30 : vector<8x128xi1>, vector<8x128xf32>
    %32 = vector.extract_strided_slice %31 {offsets = [7, 0], sizes = [1, 128], strides = [1, 1]} : vector<8x128xf32> to vector<1x128xf32>
    %c0_i32_2 = arith.constant 0 : i32
    %c1_i32 = arith.constant 1 : i32
    %33 = arith.addi %c0_i32_2, %c1_i32 : i32
    %34 = arith.index_cast %33 : i32 to index
    %c0_3 = arith.constant 0 : index
    %c0_4 = arith.constant 0 : index
    %35 = vector.load %arg2[%34, %c0_3, %c0_4] : memref<8x8x128xf32, #tpu.memory_space<vmem>>, vector<1x8x128xf32>
    %36 = vector.shape_cast %35 : vector<1x8x128xf32> to vector<8x128xf32>
    %37 = arith.index_cast %33 : i32 to index
    %c0_5 = arith.constant 0 : index
    %38 = vector.load %arg3[%37, %c0_5] : memref<8x128xf32, #tpu.memory_space<vmem>>, vector<1x128xf32>
    %39 = vector.broadcast %38 : vector<1x128xf32> to vector<8x128xf32>
    %40 = arith.mulf %36, %39 : vector<8x128xf32>
    %41 = vector.extract_strided_slice %31 {offsets = [0, 0], sizes = [1, 128], strides = [1, 1]} : vector<8x128xf32> to vector<1x128xf32>
    %42 = vector.shape_cast %41 : vector<1x128xf32> to vector<1x128xf32>
    %43 = vector.broadcast %42 : vector<1x128xf32> to vector<8x128xf32>
    %44 = arith.addf %43, %3 : vector<8x128xf32>
    %45 = vector.extract_strided_slice %31 {offsets = [1, 0], sizes = [1, 128], strides = [1, 1]} : vector<8x128xf32> to vector<1x128xf32>
    %46 = vector.shape_cast %45 : vector<1x128xf32> to vector<1x128xf32>
    %47 = vector.broadcast %46 : vector<1x128xf32> to vector<8x128xf32>
    %48 = arith.addf %47, %6 : vector<8x128xf32>
    %49 = arith.cmpf ogt, %48, %44 : vector<8x128xf32>
    %c1_i32_6 = arith.constant 1 : i32
    %50 = vector.broadcast %c1_i32_6 : i32 to vector<8x128xi32>
    %51 = arith.select %49, %50, %26 : vector<8x128xi1>, vector<8x128xi32>
    %52 = arith.maximumf %44, %48 : vector<8x128xf32>
    %53 = vector.extract_strided_slice %31 {offsets = [2, 0], sizes = [1, 128], strides = [1, 1]} : vector<8x128xf32> to vector<1x128xf32>
    %54 = vector.shape_cast %53 : vector<1x128xf32> to vector<1x128xf32>
    %55 = vector.broadcast %54 : vector<1x128xf32> to vector<8x128xf32>
    %56 = arith.addf %55, %9 : vector<8x128xf32>
    %57 = arith.cmpf ogt, %56, %52 : vector<8x128xf32>
    %c2_i32 = arith.constant 2 : i32
    %58 = vector.broadcast %c2_i32 : i32 to vector<8x128xi32>
    %59 = arith.select %57, %58, %51 : vector<8x128xi1>, vector<8x128xi32>
    %60 = arith.maximumf %52, %56 : vector<8x128xf32>
    %61 = vector.extract_strided_slice %31 {offsets = [3, 0], sizes = [1, 128], strides = [1, 1]} : vector<8x128xf32> to vector<1x128xf32>
    %62 = vector.shape_cast %61 : vector<1x128xf32> to vector<1x128xf32>
    %63 = vector.broadcast %62 : vector<1x128xf32> to vector<8x128xf32>
    %64 = arith.addf %63, %12 : vector<8x128xf32>
    %65 = arith.cmpf ogt, %64, %60 : vector<8x128xf32>
    %c3_i32 = arith.constant 3 : i32
    %66 = vector.broadcast %c3_i32 : i32 to vector<8x128xi32>
    %67 = arith.select %65, %66, %59 : vector<8x128xi1>, vector<8x128xi32>
    %68 = arith.maximumf %60, %64 : vector<8x128xf32>
    %69 = vector.extract_strided_slice %31 {offsets = [4, 0], sizes = [1, 128], strides = [1, 1]} : vector<8x128xf32> to vector<1x128xf32>
    %70 = vector.shape_cast %69 : vector<1x128xf32> to vector<1x128xf32>
    %71 = vector.broadcast %70 : vector<1x128xf32> to vector<8x128xf32>
    %72 = arith.addf %71, %15 : vector<8x128xf32>
    %73 = arith.cmpf ogt, %72, %68 : vector<8x128xf32>
    %c4_i32 = arith.constant 4 : i32
    %74 = vector.broadcast %c4_i32 : i32 to vector<8x128xi32>
    %75 = arith.select %73, %74, %67 : vector<8x128xi1>, vector<8x128xi32>
    %76 = arith.maximumf %68, %72 : vector<8x128xf32>
    %77 = vector.extract_strided_slice %31 {offsets = [5, 0], sizes = [1, 128], strides = [1, 1]} : vector<8x128xf32> to vector<1x128xf32>
    %78 = vector.shape_cast %77 : vector<1x128xf32> to vector<1x128xf32>
    %79 = vector.broadcast %78 : vector<1x128xf32> to vector<8x128xf32>
    %80 = arith.addf %79, %18 : vector<8x128xf32>
    %81 = arith.cmpf ogt, %80, %76 : vector<8x128xf32>
    %c5_i32 = arith.constant 5 : i32
    %82 = vector.broadcast %c5_i32 : i32 to vector<8x128xi32>
    %83 = arith.select %81, %82, %75 : vector<8x128xi1>, vector<8x128xi32>
    %84 = arith.maximumf %76, %80 : vector<8x128xf32>
    %85 = vector.extract_strided_slice %31 {offsets = [6, 0], sizes = [1, 128], strides = [1, 1]} : vector<8x128xf32> to vector<1x128xf32>
    %86 = vector.shape_cast %85 : vector<1x128xf32> to vector<1x128xf32>
    %87 = vector.broadcast %86 : vector<1x128xf32> to vector<8x128xf32>
    %88 = arith.addf %87, %21 : vector<8x128xf32>
    %89 = arith.cmpf ogt, %88, %84 : vector<8x128xf32>
    %c6_i32_7 = arith.constant 6 : i32
    %90 = vector.broadcast %c6_i32_7 : i32 to vector<8x128xi32>
    %91 = arith.select %89, %90, %83 : vector<8x128xi1>, vector<8x128xi32>
    %92 = arith.maximumf %84, %88 : vector<8x128xf32>
    %93 = vector.extract_strided_slice %31 {offsets = [7, 0], sizes = [1, 128], strides = [1, 1]} : vector<8x128xf32> to vector<1x128xf32>
    %94 = vector.shape_cast %93 : vector<1x128xf32> to vector<1x128xf32>
    %95 = vector.broadcast %94 : vector<1x128xf32> to vector<8x128xf32>
    %96 = arith.addf %95, %24 : vector<8x128xf32>
    %97 = arith.cmpf ogt, %96, %92 : vector<8x128xf32>
    %c7_i32 = arith.constant 7 : i32
    %98 = vector.broadcast %c7_i32 : i32 to vector<8x128xi32>
    %99 = arith.select %97, %98, %91 : vector<8x128xi1>, vector<8x128xi32>
    %100 = arith.maximumf %92, %96 : vector<8x128xf32>
    %101 = arith.index_cast %c0_i32_2 : i32 to index
    %c0_8 = arith.constant 0 : index
    %c0_9 = arith.constant 0 : index
    %102 = vector.load %arg6[%101, %c0_8, %c0_9] : memref<7x8x128xi32, #tpu.memory_space<vmem>>, vector<1x8x128xi32>
    %103 = vector.shape_cast %102 : vector<1x8x128xi32> to vector<8x128xi32>
    %104 = vector.shape_cast %99 : vector<8x128xi32> to vector<1x8x128xi32>
    tpu.vector_store %arg6[%101, %c0_8, %c0_9], %104 {strides = array<i32>} : memref<7x8x128xi32, #tpu.memory_space<vmem>>, vector<1x8x128xi32>,
    %105 = arith.addf %100, %40 : vector<8x128xf32>
    %106 = vector.extract_strided_slice %100 {offsets = [7, 0], sizes = [1, 128], strides = [1, 1]} : vector<8x128xf32> to vector<1x128xf32>
    %c1_i32_10 = arith.constant 1 : i32
    %c1_i32_11 = arith.constant 1 : i32
    %107 = arith.addi %c1_i32_10, %c1_i32_11 : i32
    %108 = arith.index_cast %107 : i32 to index
    %c0_12 = arith.constant 0 : index
    %c0_13 = arith.constant 0 : index
    %109 = vector.load %arg2[%108, %c0_12, %c0_13] : memref<8x8x128xf32, #tpu.memory_space<vmem>>, vector<1x8x128xf32>
    %110 = vector.shape_cast %109 : vector<1x8x128xf32> to vector<8x128xf32>
    %111 = arith.index_cast %107 : i32 to index
    %c0_14 = arith.constant 0 : index
    %112 = vector.load %arg3[%111, %c0_14] : memref<8x128xf32, #tpu.memory_space<vmem>>, vector<1x128xf32>
    %113 = vector.broadcast %112 : vector<1x128xf32> to vector<8x128xf32>
    %114 = arith.mulf %110, %113 : vector<8x128xf32>
    %115 = vector.extract_strided_slice %105 {offsets = [0, 0], sizes = [1, 128], strides = [1, 1]} : vector<8x128xf32> to vector<1x128xf32>
    %116 = vector.shape_cast %115 : vector<1x128xf32> to vector<1x128xf32>
    %117 = vector.broadcast %116 : vector<1x128xf32> to vector<8x128xf32>
    %118 = arith.addf %117, %3 : vector<8x128xf32>
    %119 = vector.extract_strided_slice %105 {offsets = [1, 0], sizes = [1, 128], strides = [1, 1]} : vector<8x128xf32> to vector<1x128xf32>
    %120 = vector.shape_cast %119 : vector<1x128xf32> to vector<1x128xf32>
    %121 = vector.broadcast %120 : vector<1x128xf32> to vector<8x128xf32>
    %122 = arith.addf %121, %6 : vector<8x128xf32>
    %123 = arith.cmpf ogt, %122, %118 : vector<8x128xf32>
    %c1_i32_15 = arith.constant 1 : i32
    %124 = vector.broadcast %c1_i32_15 : i32 to vector<8x128xi32>
    %125 = arith.select %123, %124, %26 : vector<8x128xi1>, vector<8x128xi32>
    %126 = arith.maximumf %118, %122 : vector<8x128xf32>
    %127 = vector.extract_strided_slice %105 {offsets = [2, 0], sizes = [1, 128], strides = [1, 1]} : vector<8x128xf32> to vector<1x128xf32>
    %128 = vector.shape_cast %127 : vector<1x128xf32> to vector<1x128xf32>
    %129 = vector.broadcast %128 : vector<1x128xf32> to vector<8x128xf32>
    %130 = arith.addf %129, %9 : vector<8x128xf32>
    %131 = arith.cmpf ogt, %130, %126 : vector<8x128xf32>
    %c2_i32_16 = arith.constant 2 : i32
    %132 = vector.broadcast %c2_i32_16 : i32 to vector<8x128xi32>
    %133 = arith.select %131, %132, %125 : vector<8x128xi1>, vector<8x128xi32>
    %134 = arith.maximumf %126, %130 : vector<8x128xf32>
    %135 = vector.extract_strided_slice %105 {offsets = [3, 0], sizes = [1, 128], strides = [1, 1]} : vector<8x128xf32> to vector<1x128xf32>
    %136 = vector.shape_cast %135 : vector<1x128xf32> to vector<1x128xf32>
    %137 = vector.broadcast %136 : vector<1x128xf32> to vector<8x128xf32>
    %138 = arith.addf %137, %12 : vector<8x128xf32>
    %139 = arith.cmpf ogt, %138, %134 : vector<8x128xf32>
    %c3_i32_17 = arith.constant 3 : i32
    %140 = vector.broadcast %c3_i32_17 : i32 to vector<8x128xi32>
    %141 = arith.select %139, %140, %133 : vector<8x128xi1>, vector<8x128xi32>
    %142 = arith.maximumf %134, %138 : vector<8x128xf32>
    %143 = vector.extract_strided_slice %105 {offsets = [4, 0], sizes = [1, 128], strides = [1, 1]} : vector<8x128xf32> to vector<1x128xf32>
    %144 = vector.shape_cast %143 : vector<1x128xf32> to vector<1x128xf32>
    %145 = vector.broadcast %144 : vector<1x128xf32> to vector<8x128xf32>
    %146 = arith.addf %145, %15 : vector<8x128xf32>
    %147 = arith.cmpf ogt, %146, %142 : vector<8x128xf32>
    %c4_i32_18 = arith.constant 4 : i32
    %148 = vector.broadcast %c4_i32_18 : i32 to vector<8x128xi32>
    %149 = arith.select %147, %148, %141 : vector<8x128xi1>, vector<8x128xi32>
    %150 = arith.maximumf %142, %146 : vector<8x128xf32>
    %151 = vector.extract_strided_slice %105 {offsets = [5, 0], sizes = [1, 128], strides = [1, 1]} : vector<8x128xf32> to vector<1x128xf32>
    %152 = vector.shape_cast %151 : vector<1x128xf32> to vector<1x128xf32>
    %153 = vector.broadcast %152 : vector<1x128xf32> to vector<8x128xf32>
    %154 = arith.addf %153, %18 : vector<8x128xf32>
    %155 = arith.cmpf ogt, %154, %150 : vector<8x128xf32>
    %c5_i32_19 = arith.constant 5 : i32
    %156 = vector.broadcast %c5_i32_19 : i32 to vector<8x128xi32>
    %157 = arith.select %155, %156, %149 : vector<8x128xi1>, vector<8x128xi32>
    %158 = arith.maximumf %150, %154 : vector<8x128xf32>
    %159 = vector.extract_strided_slice %105 {offsets = [6, 0], sizes = [1, 128], strides = [1, 1]} : vector<8x128xf32> to vector<1x128xf32>
    %160 = vector.shape_cast %159 : vector<1x128xf32> to vector<1x128xf32>
    %161 = vector.broadcast %160 : vector<1x128xf32> to vector<8x128xf32>
    %162 = arith.addf %161, %21 : vector<8x128xf32>
    %163 = arith.cmpf ogt, %162, %158 : vector<8x128xf32>
    %c6_i32_20 = arith.constant 6 : i32
    %164 = vector.broadcast %c6_i32_20 : i32 to vector<8x128xi32>
    %165 = arith.select %163, %164, %157 : vector<8x128xi1>, vector<8x128xi32>
    %166 = arith.maximumf %158, %162 : vector<8x128xf32>
    %167 = vector.extract_strided_slice %105 {offsets = [7, 0], sizes = [1, 128], strides = [1, 1]} : vector<8x128xf32> to vector<1x128xf32>
    %168 = vector.shape_cast %167 : vector<1x128xf32> to vector<1x128xf32>
    %169 = vector.broadcast %168 : vector<1x128xf32> to vector<8x128xf32>
    %170 = arith.addf %169, %24 : vector<8x128xf32>
    %171 = arith.cmpf ogt, %170, %166 : vector<8x128xf32>
    %c7_i32_21 = arith.constant 7 : i32
    %172 = vector.broadcast %c7_i32_21 : i32 to vector<8x128xi32>
    %173 = arith.select %171, %172, %165 : vector<8x128xi1>, vector<8x128xi32>
    %174 = arith.maximumf %166, %170 : vector<8x128xf32>
    %175 = arith.index_cast %c1_i32_10 : i32 to index
    %c0_22 = arith.constant 0 : index
    %c0_23 = arith.constant 0 : index
    %176 = vector.load %arg6[%175, %c0_22, %c0_23] : memref<7x8x128xi32, #tpu.memory_space<vmem>>, vector<1x8x128xi32>
    %177 = vector.shape_cast %176 : vector<1x8x128xi32> to vector<8x128xi32>
    %178 = vector.shape_cast %173 : vector<8x128xi32> to vector<1x8x128xi32>
    tpu.vector_store %arg6[%175, %c0_22, %c0_23], %178 {strides = array<i32>} : memref<7x8x128xi32, #tpu.memory_space<vmem>>, vector<1x8x128xi32>,
    %179 = arith.addf %174, %114 : vector<8x128xf32>
    %180 = vector.extract_strided_slice %174 {offsets = [7, 0], sizes = [1, 128], strides = [1, 1]} : vector<8x128xf32> to vector<1x128xf32>
    %c2_i32_24 = arith.constant 2 : i32
    %c1_i32_25 = arith.constant 1 : i32
    %181 = arith.addi %c2_i32_24, %c1_i32_25 : i32
    %182 = arith.index_cast %181 : i32 to index
    %c0_26 = arith.constant 0 : index
    %c0_27 = arith.constant 0 : index
    %183 = vector.load %arg2[%182, %c0_26, %c0_27] : memref<8x8x128xf32, #tpu.memory_space<vmem>>, vector<1x8x128xf32>
    %184 = vector.shape_cast %183 : vector<1x8x128xf32> to vector<8x128xf32>
    %185 = arith.index_cast %181 : i32 to index
    %c0_28 = arith.constant 0 : index
    %186 = vector.load %arg3[%185, %c0_28] : memref<8x128xf32, #tpu.memory_space<vmem>>, vector<1x128xf32>
    %187 = vector.broadcast %186 : vector<1x128xf32> to vector<8x128xf32>
    %188 = arith.mulf %184, %187 : vector<8x128xf32>
    %189 = vector.extract_strided_slice %179 {offsets = [0, 0], sizes = [1, 128], strides = [1, 1]} : vector<8x128xf32> to vector<1x128xf32>
    %190 = vector.shape_cast %189 : vector<1x128xf32> to vector<1x128xf32>
    %191 = vector.broadcast %190 : vector<1x128xf32> to vector<8x128xf32>
    %192 = arith.addf %191, %3 : vector<8x128xf32>
    %193 = vector.extract_strided_slice %179 {offsets = [1, 0], sizes = [1, 128], strides = [1, 1]} : vector<8x128xf32> to vector<1x128xf32>
    %194 = vector.shape_cast %193 : vector<1x128xf32> to vector<1x128xf32>
    %195 = vector.broadcast %194 : vector<1x128xf32> to vector<8x128xf32>
    %196 = arith.addf %195, %6 : vector<8x128xf32>
    %197 = arith.cmpf ogt, %196, %192 : vector<8x128xf32>
    %c1_i32_29 = arith.constant 1 : i32
    %198 = vector.broadcast %c1_i32_29 : i32 to vector<8x128xi32>
    %199 = arith.select %197, %198, %26 : vector<8x128xi1>, vector<8x128xi32>
    %200 = arith.maximumf %192, %196 : vector<8x128xf32>
    %201 = vector.extract_strided_slice %179 {offsets = [2, 0], sizes = [1, 128], strides = [1, 1]} : vector<8x128xf32> to vector<1x128xf32>
    %202 = vector.shape_cast %201 : vector<1x128xf32> to vector<1x128xf32>
    %203 = vector.broadcast %202 : vector<1x128xf32> to vector<8x128xf32>
    %204 = arith.addf %203, %9 : vector<8x128xf32>
    %205 = arith.cmpf ogt, %204, %200 : vector<8x128xf32>
    %c2_i32_30 = arith.constant 2 : i32
    %206 = vector.broadcast %c2_i32_30 : i32 to vector<8x128xi32>
    %207 = arith.select %205, %206, %199 : vector<8x128xi1>, vector<8x128xi32>
    %208 = arith.maximumf %200, %204 : vector<8x128xf32>
    %209 = vector.extract_strided_slice %179 {offsets = [3, 0], sizes = [1, 128], strides = [1, 1]} : vector<8x128xf32> to vector<1x128xf32>
    %210 = vector.shape_cast %209 : vector<1x128xf32> to vector<1x128xf32>
    %211 = vector.broadcast %210 : vector<1x128xf32> to vector<8x128xf32>
    %212 = arith.addf %211, %12 : vector<8x128xf32>
    %213 = arith.cmpf ogt, %212, %208 : vector<8x128xf32>
    %c3_i32_31 = arith.constant 3 : i32
    %214 = vector.broadcast %c3_i32_31 : i32 to vector<8x128xi32>
    %215 = arith.select %213, %214, %207 : vector<8x128xi1>, vector<8x128xi32>
    %216 = arith.maximumf %208, %212 : vector<8x128xf32>
    %217 = vector.extract_strided_slice %179 {offsets = [4, 0], sizes = [1, 128], strides = [1, 1]} : vector<8x128xf32> to vector<1x128xf32>
    %218 = vector.shape_cast %217 : vector<1x128xf32> to vector<1x128xf32>
    %219 = vector.broadcast %218 : vector<1x128xf32> to vector<8x128xf32>
    %220 = arith.addf %219, %15 : vector<8x128xf32>
    %221 = arith.cmpf ogt, %220, %216 : vector<8x128xf32>
    %c4_i32_32 = arith.constant 4 : i32
    %222 = vector.broadcast %c4_i32_32 : i32 to vector<8x128xi32>
    %223 = arith.select %221, %222, %215 : vector<8x128xi1>, vector<8x128xi32>
    %224 = arith.maximumf %216, %220 : vector<8x128xf32>
    %225 = vector.extract_strided_slice %179 {offsets = [5, 0], sizes = [1, 128], strides = [1, 1]} : vector<8x128xf32> to vector<1x128xf32>
    %226 = vector.shape_cast %225 : vector<1x128xf32> to vector<1x128xf32>
    %227 = vector.broadcast %226 : vector<1x128xf32> to vector<8x128xf32>
    %228 = arith.addf %227, %18 : vector<8x128xf32>
    %229 = arith.cmpf ogt, %228, %224 : vector<8x128xf32>
    %c5_i32_33 = arith.constant 5 : i32
    %230 = vector.broadcast %c5_i32_33 : i32 to vector<8x128xi32>
    %231 = arith.select %229, %230, %223 : vector<8x128xi1>, vector<8x128xi32>
    %232 = arith.maximumf %224, %228 : vector<8x128xf32>
    %233 = vector.extract_strided_slice %179 {offsets = [6, 0], sizes = [1, 128], strides = [1, 1]} : vector<8x128xf32> to vector<1x128xf32>
    %234 = vector.shape_cast %233 : vector<1x128xf32> to vector<1x128xf32>
    %235 = vector.broadcast %234 : vector<1x128xf32> to vector<8x128xf32>
    %236 = arith.addf %235, %21 : vector<8x128xf32>
    %237 = arith.cmpf ogt, %236, %232 : vector<8x128xf32>
    %c6_i32_34 = arith.constant 6 : i32
    %238 = vector.broadcast %c6_i32_34 : i32 to vector<8x128xi32>
    %239 = arith.select %237, %238, %231 : vector<8x128xi1>, vector<8x128xi32>
    %240 = arith.maximumf %232, %236 : vector<8x128xf32>
    %241 = vector.extract_strided_slice %179 {offsets = [7, 0], sizes = [1, 128], strides = [1, 1]} : vector<8x128xf32> to vector<1x128xf32>
    %242 = vector.shape_cast %241 : vector<1x128xf32> to vector<1x128xf32>
    %243 = vector.broadcast %242 : vector<1x128xf32> to vector<8x128xf32>
    %244 = arith.addf %243, %24 : vector<8x128xf32>
    %245 = arith.cmpf ogt, %244, %240 : vector<8x128xf32>
    %c7_i32_35 = arith.constant 7 : i32
    %246 = vector.broadcast %c7_i32_35 : i32 to vector<8x128xi32>
    %247 = arith.select %245, %246, %239 : vector<8x128xi1>, vector<8x128xi32>
    %248 = arith.maximumf %240, %244 : vector<8x128xf32>
    %249 = arith.index_cast %c2_i32_24 : i32 to index
    %c0_36 = arith.constant 0 : index
    %c0_37 = arith.constant 0 : index
    %250 = vector.load %arg6[%249, %c0_36, %c0_37] : memref<7x8x128xi32, #tpu.memory_space<vmem>>, vector<1x8x128xi32>
    %251 = vector.shape_cast %250 : vector<1x8x128xi32> to vector<8x128xi32>
    %252 = vector.shape_cast %247 : vector<8x128xi32> to vector<1x8x128xi32>
    tpu.vector_store %arg6[%249, %c0_36, %c0_37], %252 {strides = array<i32>} : memref<7x8x128xi32, #tpu.memory_space<vmem>>, vector<1x8x128xi32>,
    %253 = arith.addf %248, %188 : vector<8x128xf32>
    %254 = vector.extract_strided_slice %248 {offsets = [7, 0], sizes = [1, 128], strides = [1, 1]} : vector<8x128xf32> to vector<1x128xf32>
    %c3_i32_38 = arith.constant 3 : i32
    %c1_i32_39 = arith.constant 1 : i32
    %255 = arith.addi %c3_i32_38, %c1_i32_39 : i32
    %256 = arith.index_cast %255 : i32 to index
    %c0_40 = arith.constant 0 : index
    %c0_41 = arith.constant 0 : index
    %257 = vector.load %arg2[%256, %c0_40, %c0_41] : memref<8x8x128xf32, #tpu.memory_space<vmem>>, vector<1x8x128xf32>
    %258 = vector.shape_cast %257 : vector<1x8x128xf32> to vector<8x128xf32>
    %259 = arith.index_cast %255 : i32 to index
    %c0_42 = arith.constant 0 : index
    %260 = vector.load %arg3[%259, %c0_42] : memref<8x128xf32, #tpu.memory_space<vmem>>, vector<1x128xf32>
    %261 = vector.broadcast %260 : vector<1x128xf32> to vector<8x128xf32>
    %262 = arith.mulf %258, %261 : vector<8x128xf32>
    %263 = vector.extract_strided_slice %253 {offsets = [0, 0], sizes = [1, 128], strides = [1, 1]} : vector<8x128xf32> to vector<1x128xf32>
    %264 = vector.shape_cast %263 : vector<1x128xf32> to vector<1x128xf32>
    %265 = vector.broadcast %264 : vector<1x128xf32> to vector<8x128xf32>
    %266 = arith.addf %265, %3 : vector<8x128xf32>
    %267 = vector.extract_strided_slice %253 {offsets = [1, 0], sizes = [1, 128], strides = [1, 1]} : vector<8x128xf32> to vector<1x128xf32>
    %268 = vector.shape_cast %267 : vector<1x128xf32> to vector<1x128xf32>
    %269 = vector.broadcast %268 : vector<1x128xf32> to vector<8x128xf32>
    %270 = arith.addf %269, %6 : vector<8x128xf32>
    %271 = arith.cmpf ogt, %270, %266 : vector<8x128xf32>
    %c1_i32_43 = arith.constant 1 : i32
    %272 = vector.broadcast %c1_i32_43 : i32 to vector<8x128xi32>
    %273 = arith.select %271, %272, %26 : vector<8x128xi1>, vector<8x128xi32>
    %274 = arith.maximumf %266, %270 : vector<8x128xf32>
    %275 = vector.extract_strided_slice %253 {offsets = [2, 0], sizes = [1, 128], strides = [1, 1]} : vector<8x128xf32> to vector<1x128xf32>
    %276 = vector.shape_cast %275 : vector<1x128xf32> to vector<1x128xf32>
    %277 = vector.broadcast %276 : vector<1x128xf32> to vector<8x128xf32>
    %278 = arith.addf %277, %9 : vector<8x128xf32>
    %279 = arith.cmpf ogt, %278, %274 : vector<8x128xf32>
    %c2_i32_44 = arith.constant 2 : i32
    %280 = vector.broadcast %c2_i32_44 : i32 to vector<8x128xi32>
    %281 = arith.select %279, %280, %273 : vector<8x128xi1>, vector<8x128xi32>
    %282 = arith.maximumf %274, %278 : vector<8x128xf32>
    %283 = vector.extract_strided_slice %253 {offsets = [3, 0], sizes = [1, 128], strides = [1, 1]} : vector<8x128xf32> to vector<1x128xf32>
    %284 = vector.shape_cast %283 : vector<1x128xf32> to vector<1x128xf32>
    %285 = vector.broadcast %284 : vector<1x128xf32> to vector<8x128xf32>
    %286 = arith.addf %285, %12 : vector<8x128xf32>
    %287 = arith.cmpf ogt, %286, %282 : vector<8x128xf32>
    %c3_i32_45 = arith.constant 3 : i32
    %288 = vector.broadcast %c3_i32_45 : i32 to vector<8x128xi32>
    %289 = arith.select %287, %288, %281 : vector<8x128xi1>, vector<8x128xi32>
    %290 = arith.maximumf %282, %286 : vector<8x128xf32>
    %291 = vector.extract_strided_slice %253 {offsets = [4, 0], sizes = [1, 128], strides = [1, 1]} : vector<8x128xf32> to vector<1x128xf32>
    %292 = vector.shape_cast %291 : vector<1x128xf32> to vector<1x128xf32>
    %293 = vector.broadcast %292 : vector<1x128xf32> to vector<8x128xf32>
    %294 = arith.addf %293, %15 : vector<8x128xf32>
    %295 = arith.cmpf ogt, %294, %290 : vector<8x128xf32>
    %c4_i32_46 = arith.constant 4 : i32
    %296 = vector.broadcast %c4_i32_46 : i32 to vector<8x128xi32>
    %297 = arith.select %295, %296, %289 : vector<8x128xi1>, vector<8x128xi32>
    %298 = arith.maximumf %290, %294 : vector<8x128xf32>
    %299 = vector.extract_strided_slice %253 {offsets = [5, 0], sizes = [1, 128], strides = [1, 1]} : vector<8x128xf32> to vector<1x128xf32>
    %300 = vector.shape_cast %299 : vector<1x128xf32> to vector<1x128xf32>
    %301 = vector.broadcast %300 : vector<1x128xf32> to vector<8x128xf32>
    %302 = arith.addf %301, %18 : vector<8x128xf32>
    %303 = arith.cmpf ogt, %302, %298 : vector<8x128xf32>
    %c5_i32_47 = arith.constant 5 : i32
    %304 = vector.broadcast %c5_i32_47 : i32 to vector<8x128xi32>
    %305 = arith.select %303, %304, %297 : vector<8x128xi1>, vector<8x128xi32>
    %306 = arith.maximumf %298, %302 : vector<8x128xf32>
    %307 = vector.extract_strided_slice %253 {offsets = [6, 0], sizes = [1, 128], strides = [1, 1]} : vector<8x128xf32> to vector<1x128xf32>
    %308 = vector.shape_cast %307 : vector<1x128xf32> to vector<1x128xf32>
    %309 = vector.broadcast %308 : vector<1x128xf32> to vector<8x128xf32>
    %310 = arith.addf %309, %21 : vector<8x128xf32>
    %311 = arith.cmpf ogt, %310, %306 : vector<8x128xf32>
    %c6_i32_48 = arith.constant 6 : i32
    %312 = vector.broadcast %c6_i32_48 : i32 to vector<8x128xi32>
    %313 = arith.select %311, %312, %305 : vector<8x128xi1>, vector<8x128xi32>
    %314 = arith.maximumf %306, %310 : vector<8x128xf32>
    %315 = vector.extract_strided_slice %253 {offsets = [7, 0], sizes = [1, 128], strides = [1, 1]} : vector<8x128xf32> to vector<1x128xf32>
    %316 = vector.shape_cast %315 : vector<1x128xf32> to vector<1x128xf32>
    %317 = vector.broadcast %316 : vector<1x128xf32> to vector<8x128xf32>
    %318 = arith.addf %317, %24 : vector<8x128xf32>
    %319 = arith.cmpf ogt, %318, %314 : vector<8x128xf32>
    %c7_i32_49 = arith.constant 7 : i32
    %320 = vector.broadcast %c7_i32_49 : i32 to vector<8x128xi32>
    %321 = arith.select %319, %320, %313 : vector<8x128xi1>, vector<8x128xi32>
    %322 = arith.maximumf %314, %318 : vector<8x128xf32>
    %323 = arith.index_cast %c3_i32_38 : i32 to index
    %c0_50 = arith.constant 0 : index
    %c0_51 = arith.constant 0 : index
    %324 = vector.load %arg6[%323, %c0_50, %c0_51] : memref<7x8x128xi32, #tpu.memory_space<vmem>>, vector<1x8x128xi32>
    %325 = vector.shape_cast %324 : vector<1x8x128xi32> to vector<8x128xi32>
    %326 = vector.shape_cast %321 : vector<8x128xi32> to vector<1x8x128xi32>
    tpu.vector_store %arg6[%323, %c0_50, %c0_51], %326 {strides = array<i32>} : memref<7x8x128xi32, #tpu.memory_space<vmem>>, vector<1x8x128xi32>,
    %327 = arith.addf %322, %262 : vector<8x128xf32>
    %328 = vector.extract_strided_slice %322 {offsets = [7, 0], sizes = [1, 128], strides = [1, 1]} : vector<8x128xf32> to vector<1x128xf32>
    %c4_i32_52 = arith.constant 4 : i32
    %c1_i32_53 = arith.constant 1 : i32
    %329 = arith.addi %c4_i32_52, %c1_i32_53 : i32
    %330 = arith.index_cast %329 : i32 to index
    %c0_54 = arith.constant 0 : index
    %c0_55 = arith.constant 0 : index
    %331 = vector.load %arg2[%330, %c0_54, %c0_55] : memref<8x8x128xf32, #tpu.memory_space<vmem>>, vector<1x8x128xf32>
    %332 = vector.shape_cast %331 : vector<1x8x128xf32> to vector<8x128xf32>
    %333 = arith.index_cast %329 : i32 to index
    %c0_56 = arith.constant 0 : index
    %334 = vector.load %arg3[%333, %c0_56] : memref<8x128xf32, #tpu.memory_space<vmem>>, vector<1x128xf32>
    %335 = vector.broadcast %334 : vector<1x128xf32> to vector<8x128xf32>
    %336 = arith.mulf %332, %335 : vector<8x128xf32>
    %337 = vector.extract_strided_slice %327 {offsets = [0, 0], sizes = [1, 128], strides = [1, 1]} : vector<8x128xf32> to vector<1x128xf32>
    %338 = vector.shape_cast %337 : vector<1x128xf32> to vector<1x128xf32>
    %339 = vector.broadcast %338 : vector<1x128xf32> to vector<8x128xf32>
    %340 = arith.addf %339, %3 : vector<8x128xf32>
    %341 = vector.extract_strided_slice %327 {offsets = [1, 0], sizes = [1, 128], strides = [1, 1]} : vector<8x128xf32> to vector<1x128xf32>
    %342 = vector.shape_cast %341 : vector<1x128xf32> to vector<1x128xf32>
    %343 = vector.broadcast %342 : vector<1x128xf32> to vector<8x128xf32>
    %344 = arith.addf %343, %6 : vector<8x128xf32>
    %345 = arith.cmpf ogt, %344, %340 : vector<8x128xf32>
    %c1_i32_57 = arith.constant 1 : i32
    %346 = vector.broadcast %c1_i32_57 : i32 to vector<8x128xi32>
    %347 = arith.select %345, %346, %26 : vector<8x128xi1>, vector<8x128xi32>
    %348 = arith.maximumf %340, %344 : vector<8x128xf32>
    %349 = vector.extract_strided_slice %327 {offsets = [2, 0], sizes = [1, 128], strides = [1, 1]} : vector<8x128xf32> to vector<1x128xf32>
    %350 = vector.shape_cast %349 : vector<1x128xf32> to vector<1x128xf32>
    %351 = vector.broadcast %350 : vector<1x128xf32> to vector<8x128xf32>
    %352 = arith.addf %351, %9 : vector<8x128xf32>
    %353 = arith.cmpf ogt, %352, %348 : vector<8x128xf32>
    %c2_i32_58 = arith.constant 2 : i32
    %354 = vector.broadcast %c2_i32_58 : i32 to vector<8x128xi32>
    %355 = arith.select %353, %354, %347 : vector<8x128xi1>, vector<8x128xi32>
    %356 = arith.maximumf %348, %352 : vector<8x128xf32>
    %357 = vector.extract_strided_slice %327 {offsets = [3, 0], sizes = [1, 128], strides = [1, 1]} : vector<8x128xf32> to vector<1x128xf32>
    %358 = vector.shape_cast %357 : vector<1x128xf32> to vector<1x128xf32>
    %359 = vector.broadcast %358 : vector<1x128xf32> to vector<8x128xf32>
    %360 = arith.addf %359, %12 : vector<8x128xf32>
    %361 = arith.cmpf ogt, %360, %356 : vector<8x128xf32>
    %c3_i32_59 = arith.constant 3 : i32
    %362 = vector.broadcast %c3_i32_59 : i32 to vector<8x128xi32>
    %363 = arith.select %361, %362, %355 : vector<8x128xi1>, vector<8x128xi32>
    %364 = arith.maximumf %356, %360 : vector<8x128xf32>
    %365 = vector.extract_strided_slice %327 {offsets = [4, 0], sizes = [1, 128], strides = [1, 1]} : vector<8x128xf32> to vector<1x128xf32>
    %366 = vector.shape_cast %365 : vector<1x128xf32> to vector<1x128xf32>
    %367 = vector.broadcast %366 : vector<1x128xf32> to vector<8x128xf32>
    %368 = arith.addf %367, %15 : vector<8x128xf32>
    %369 = arith.cmpf ogt, %368, %364 : vector<8x128xf32>
    %c4_i32_60 = arith.constant 4 : i32
    %370 = vector.broadcast %c4_i32_60 : i32 to vector<8x128xi32>
    %371 = arith.select %369, %370, %363 : vector<8x128xi1>, vector<8x128xi32>
    %372 = arith.maximumf %364, %368 : vector<8x128xf32>
    %373 = vector.extract_strided_slice %327 {offsets = [5, 0], sizes = [1, 128], strides = [1, 1]} : vector<8x128xf32> to vector<1x128xf32>
    %374 = vector.shape_cast %373 : vector<1x128xf32> to vector<1x128xf32>
    %375 = vector.broadcast %374 : vector<1x128xf32> to vector<8x128xf32>
    %376 = arith.addf %375, %18 : vector<8x128xf32>
    %377 = arith.cmpf ogt, %376, %372 : vector<8x128xf32>
    %c5_i32_61 = arith.constant 5 : i32
    %378 = vector.broadcast %c5_i32_61 : i32 to vector<8x128xi32>
    %379 = arith.select %377, %378, %371 : vector<8x128xi1>, vector<8x128xi32>
    %380 = arith.maximumf %372, %376 : vector<8x128xf32>
    %381 = vector.extract_strided_slice %327 {offsets = [6, 0], sizes = [1, 128], strides = [1, 1]} : vector<8x128xf32> to vector<1x128xf32>
    %382 = vector.shape_cast %381 : vector<1x128xf32> to vector<1x128xf32>
    %383 = vector.broadcast %382 : vector<1x128xf32> to vector<8x128xf32>
    %384 = arith.addf %383, %21 : vector<8x128xf32>
    %385 = arith.cmpf ogt, %384, %380 : vector<8x128xf32>
    %c6_i32_62 = arith.constant 6 : i32
    %386 = vector.broadcast %c6_i32_62 : i32 to vector<8x128xi32>
    %387 = arith.select %385, %386, %379 : vector<8x128xi1>, vector<8x128xi32>
    %388 = arith.maximumf %380, %384 : vector<8x128xf32>
    %389 = vector.extract_strided_slice %327 {offsets = [7, 0], sizes = [1, 128], strides = [1, 1]} : vector<8x128xf32> to vector<1x128xf32>
    %390 = vector.shape_cast %389 : vector<1x128xf32> to vector<1x128xf32>
    %391 = vector.broadcast %390 : vector<1x128xf32> to vector<8x128xf32>
    %392 = arith.addf %391, %24 : vector<8x128xf32>
    %393 = arith.cmpf ogt, %392, %388 : vector<8x128xf32>
    %c7_i32_63 = arith.constant 7 : i32
    %394 = vector.broadcast %c7_i32_63 : i32 to vector<8x128xi32>
    %395 = arith.select %393, %394, %387 : vector<8x128xi1>, vector<8x128xi32>
    %396 = arith.maximumf %388, %392 : vector<8x128xf32>
    %397 = arith.index_cast %c4_i32_52 : i32 to index
    %c0_64 = arith.constant 0 : index
    %c0_65 = arith.constant 0 : index
    %398 = vector.load %arg6[%397, %c0_64, %c0_65] : memref<7x8x128xi32, #tpu.memory_space<vmem>>, vector<1x8x128xi32>
    %399 = vector.shape_cast %398 : vector<1x8x128xi32> to vector<8x128xi32>
    %400 = vector.shape_cast %395 : vector<8x128xi32> to vector<1x8x128xi32>
    tpu.vector_store %arg6[%397, %c0_64, %c0_65], %400 {strides = array<i32>} : memref<7x8x128xi32, #tpu.memory_space<vmem>>, vector<1x8x128xi32>,
    %401 = arith.addf %396, %336 : vector<8x128xf32>
    %402 = vector.extract_strided_slice %396 {offsets = [7, 0], sizes = [1, 128], strides = [1, 1]} : vector<8x128xf32> to vector<1x128xf32>
    %c5_i32_66 = arith.constant 5 : i32
    %c1_i32_67 = arith.constant 1 : i32
    %403 = arith.addi %c5_i32_66, %c1_i32_67 : i32
    %404 = arith.index_cast %403 : i32 to index
    %c0_68 = arith.constant 0 : index
    %c0_69 = arith.constant 0 : index
    %405 = vector.load %arg2[%404, %c0_68, %c0_69] : memref<8x8x128xf32, #tpu.memory_space<vmem>>, vector<1x8x128xf32>
    %406 = vector.shape_cast %405 : vector<1x8x128xf32> to vector<8x128xf32>
    %407 = arith.index_cast %403 : i32 to index
    %c0_70 = arith.constant 0 : index
    %408 = vector.load %arg3[%407, %c0_70] : memref<8x128xf32, #tpu.memory_space<vmem>>, vector<1x128xf32>
    %409 = vector.broadcast %408 : vector<1x128xf32> to vector<8x128xf32>
    %410 = arith.mulf %406, %409 : vector<8x128xf32>
    %411 = vector.extract_strided_slice %401 {offsets = [0, 0], sizes = [1, 128], strides = [1, 1]} : vector<8x128xf32> to vector<1x128xf32>
    %412 = vector.shape_cast %411 : vector<1x128xf32> to vector<1x128xf32>
    %413 = vector.broadcast %412 : vector<1x128xf32> to vector<8x128xf32>
    %414 = arith.addf %413, %3 : vector<8x128xf32>
    %415 = vector.extract_strided_slice %401 {offsets = [1, 0], sizes = [1, 128], strides = [1, 1]} : vector<8x128xf32> to vector<1x128xf32>
    %416 = vector.shape_cast %415 : vector<1x128xf32> to vector<1x128xf32>
    %417 = vector.broadcast %416 : vector<1x128xf32> to vector<8x128xf32>
    %418 = arith.addf %417, %6 : vector<8x128xf32>
    %419 = arith.cmpf ogt, %418, %414 : vector<8x128xf32>
    %c1_i32_71 = arith.constant 1 : i32
    %420 = vector.broadcast %c1_i32_71 : i32 to vector<8x128xi32>
    %421 = arith.select %419, %420, %26 : vector<8x128xi1>, vector<8x128xi32>
    %422 = arith.maximumf %414, %418 : vector<8x128xf32>
    %423 = vector.extract_strided_slice %401 {offsets = [2, 0], sizes = [1, 128], strides = [1, 1]} : vector<8x128xf32> to vector<1x128xf32>
    %424 = vector.shape_cast %423 : vector<1x128xf32> to vector<1x128xf32>
    %425 = vector.broadcast %424 : vector<1x128xf32> to vector<8x128xf32>
    %426 = arith.addf %425, %9 : vector<8x128xf32>
    %427 = arith.cmpf ogt, %426, %422 : vector<8x128xf32>
    %c2_i32_72 = arith.constant 2 : i32
    %428 = vector.broadcast %c2_i32_72 : i32 to vector<8x128xi32>
    %429 = arith.select %427, %428, %421 : vector<8x128xi1>, vector<8x128xi32>
    %430 = arith.maximumf %422, %426 : vector<8x128xf32>
    %431 = vector.extract_strided_slice %401 {offsets = [3, 0], sizes = [1, 128], strides = [1, 1]} : vector<8x128xf32> to vector<1x128xf32>
    %432 = vector.shape_cast %431 : vector<1x128xf32> to vector<1x128xf32>
    %433 = vector.broadcast %432 : vector<1x128xf32> to vector<8x128xf32>
    %434 = arith.addf %433, %12 : vector<8x128xf32>
    %435 = arith.cmpf ogt, %434, %430 : vector<8x128xf32>
    %c3_i32_73 = arith.constant 3 : i32
    %436 = vector.broadcast %c3_i32_73 : i32 to vector<8x128xi32>
    %437 = arith.select %435, %436, %429 : vector<8x128xi1>, vector<8x128xi32>
    %438 = arith.maximumf %430, %434 : vector<8x128xf32>
    %439 = vector.extract_strided_slice %401 {offsets = [4, 0], sizes = [1, 128], strides = [1, 1]} : vector<8x128xf32> to vector<1x128xf32>
    %440 = vector.shape_cast %439 : vector<1x128xf32> to vector<1x128xf32>
    %441 = vector.broadcast %440 : vector<1x128xf32> to vector<8x128xf32>
    %442 = arith.addf %441, %15 : vector<8x128xf32>
    %443 = arith.cmpf ogt, %442, %438 : vector<8x128xf32>
    %c4_i32_74 = arith.constant 4 : i32
    %444 = vector.broadcast %c4_i32_74 : i32 to vector<8x128xi32>
    %445 = arith.select %443, %444, %437 : vector<8x128xi1>, vector<8x128xi32>
    %446 = arith.maximumf %438, %442 : vector<8x128xf32>
    %447 = vector.extract_strided_slice %401 {offsets = [5, 0], sizes = [1, 128], strides = [1, 1]} : vector<8x128xf32> to vector<1x128xf32>
    %448 = vector.shape_cast %447 : vector<1x128xf32> to vector<1x128xf32>
    %449 = vector.broadcast %448 : vector<1x128xf32> to vector<8x128xf32>
    %450 = arith.addf %449, %18 : vector<8x128xf32>
    %451 = arith.cmpf ogt, %450, %446 : vector<8x128xf32>
    %c5_i32_75 = arith.constant 5 : i32
    %452 = vector.broadcast %c5_i32_75 : i32 to vector<8x128xi32>
    %453 = arith.select %451, %452, %445 : vector<8x128xi1>, vector<8x128xi32>
    %454 = arith.maximumf %446, %450 : vector<8x128xf32>
    %455 = vector.extract_strided_slice %401 {offsets = [6, 0], sizes = [1, 128], strides = [1, 1]} : vector<8x128xf32> to vector<1x128xf32>
    %456 = vector.shape_cast %455 : vector<1x128xf32> to vector<1x128xf32>
    %457 = vector.broadcast %456 : vector<1x128xf32> to vector<8x128xf32>
    %458 = arith.addf %457, %21 : vector<8x128xf32>
    %459 = arith.cmpf ogt, %458, %454 : vector<8x128xf32>
    %c6_i32_76 = arith.constant 6 : i32
    %460 = vector.broadcast %c6_i32_76 : i32 to vector<8x128xi32>
    %461 = arith.select %459, %460, %453 : vector<8x128xi1>, vector<8x128xi32>
    %462 = arith.maximumf %454, %458 : vector<8x128xf32>
    %463 = vector.extract_strided_slice %401 {offsets = [7, 0], sizes = [1, 128], strides = [1, 1]} : vector<8x128xf32> to vector<1x128xf32>
    %464 = vector.shape_cast %463 : vector<1x128xf32> to vector<1x128xf32>
    %465 = vector.broadcast %464 : vector<1x128xf32> to vector<8x128xf32>
    %466 = arith.addf %465, %24 : vector<8x128xf32>
    %467 = arith.cmpf ogt, %466, %462 : vector<8x128xf32>
    %c7_i32_77 = arith.constant 7 : i32
    %468 = vector.broadcast %c7_i32_77 : i32 to vector<8x128xi32>
    %469 = arith.select %467, %468, %461 : vector<8x128xi1>, vector<8x128xi32>
    %470 = arith.maximumf %462, %466 : vector<8x128xf32>
    %471 = arith.index_cast %c5_i32_66 : i32 to index
    %c0_78 = arith.constant 0 : index
    %c0_79 = arith.constant 0 : index
    %472 = vector.load %arg6[%471, %c0_78, %c0_79] : memref<7x8x128xi32, #tpu.memory_space<vmem>>, vector<1x8x128xi32>
    %473 = vector.shape_cast %472 : vector<1x8x128xi32> to vector<8x128xi32>
    %474 = vector.shape_cast %469 : vector<8x128xi32> to vector<1x8x128xi32>
    tpu.vector_store %arg6[%471, %c0_78, %c0_79], %474 {strides = array<i32>} : memref<7x8x128xi32, #tpu.memory_space<vmem>>, vector<1x8x128xi32>,
    %475 = arith.addf %470, %410 : vector<8x128xf32>
    %476 = vector.extract_strided_slice %470 {offsets = [7, 0], sizes = [1, 128], strides = [1, 1]} : vector<8x128xf32> to vector<1x128xf32>
    %c6_i32_80 = arith.constant 6 : i32
    %c1_i32_81 = arith.constant 1 : i32
    %477 = arith.addi %c6_i32_80, %c1_i32_81 : i32
    %478 = arith.index_cast %477 : i32 to index
    %c0_82 = arith.constant 0 : index
    %c0_83 = arith.constant 0 : index
    %479 = vector.load %arg2[%478, %c0_82, %c0_83] : memref<8x8x128xf32, #tpu.memory_space<vmem>>, vector<1x8x128xf32>
    %480 = vector.shape_cast %479 : vector<1x8x128xf32> to vector<8x128xf32>
    %481 = arith.index_cast %477 : i32 to index
    %c0_84 = arith.constant 0 : index
    %482 = vector.load %arg3[%481, %c0_84] : memref<8x128xf32, #tpu.memory_space<vmem>>, vector<1x128xf32>
    %483 = vector.broadcast %482 : vector<1x128xf32> to vector<8x128xf32>
    %484 = arith.mulf %480, %483 : vector<8x128xf32>
    %485 = vector.extract_strided_slice %475 {offsets = [0, 0], sizes = [1, 128], strides = [1, 1]} : vector<8x128xf32> to vector<1x128xf32>
    %486 = vector.shape_cast %485 : vector<1x128xf32> to vector<1x128xf32>
    %487 = vector.broadcast %486 : vector<1x128xf32> to vector<8x128xf32>
    %488 = arith.addf %487, %3 : vector<8x128xf32>
    %489 = vector.extract_strided_slice %475 {offsets = [1, 0], sizes = [1, 128], strides = [1, 1]} : vector<8x128xf32> to vector<1x128xf32>
    %490 = vector.shape_cast %489 : vector<1x128xf32> to vector<1x128xf32>
    %491 = vector.broadcast %490 : vector<1x128xf32> to vector<8x128xf32>
    %492 = arith.addf %491, %6 : vector<8x128xf32>
    %493 = arith.cmpf ogt, %492, %488 : vector<8x128xf32>
    %c1_i32_85 = arith.constant 1 : i32
    %494 = vector.broadcast %c1_i32_85 : i32 to vector<8x128xi32>
    %495 = arith.select %493, %494, %26 : vector<8x128xi1>, vector<8x128xi32>
    %496 = arith.maximumf %488, %492 : vector<8x128xf32>
    %497 = vector.extract_strided_slice %475 {offsets = [2, 0], sizes = [1, 128], strides = [1, 1]} : vector<8x128xf32> to vector<1x128xf32>
    %498 = vector.shape_cast %497 : vector<1x128xf32> to vector<1x128xf32>
    %499 = vector.broadcast %498 : vector<1x128xf32> to vector<8x128xf32>
    %500 = arith.addf %499, %9 : vector<8x128xf32>
    %501 = arith.cmpf ogt, %500, %496 : vector<8x128xf32>
    %c2_i32_86 = arith.constant 2 : i32
    %502 = vector.broadcast %c2_i32_86 : i32 to vector<8x128xi32>
    %503 = arith.select %501, %502, %495 : vector<8x128xi1>, vector<8x128xi32>
    %504 = arith.maximumf %496, %500 : vector<8x128xf32>
    %505 = vector.extract_strided_slice %475 {offsets = [3, 0], sizes = [1, 128], strides = [1, 1]} : vector<8x128xf32> to vector<1x128xf32>
    %506 = vector.shape_cast %505 : vector<1x128xf32> to vector<1x128xf32>
    %507 = vector.broadcast %506 : vector<1x128xf32> to vector<8x128xf32>
    %508 = arith.addf %507, %12 : vector<8x128xf32>
    %509 = arith.cmpf ogt, %508, %504 : vector<8x128xf32>
    %c3_i32_87 = arith.constant 3 : i32
    %510 = vector.broadcast %c3_i32_87 : i32 to vector<8x128xi32>
    %511 = arith.select %509, %510, %503 : vector<8x128xi1>, vector<8x128xi32>
    %512 = arith.maximumf %504, %508 : vector<8x128xf32>
    %513 = vector.extract_strided_slice %475 {offsets = [4, 0], sizes = [1, 128], strides = [1, 1]} : vector<8x128xf32> to vector<1x128xf32>
    %514 = vector.shape_cast %513 : vector<1x128xf32> to vector<1x128xf32>
    %515 = vector.broadcast %514 : vector<1x128xf32> to vector<8x128xf32>
    %516 = arith.addf %515, %15 : vector<8x128xf32>
    %517 = arith.cmpf ogt, %516, %512 : vector<8x128xf32>
    %c4_i32_88 = arith.constant 4 : i32
    %518 = vector.broadcast %c4_i32_88 : i32 to vector<8x128xi32>
    %519 = arith.select %517, %518, %511 : vector<8x128xi1>, vector<8x128xi32>
    %520 = arith.maximumf %512, %516 : vector<8x128xf32>
    %521 = vector.extract_strided_slice %475 {offsets = [5, 0], sizes = [1, 128], strides = [1, 1]} : vector<8x128xf32> to vector<1x128xf32>
    %522 = vector.shape_cast %521 : vector<1x128xf32> to vector<1x128xf32>
    %523 = vector.broadcast %522 : vector<1x128xf32> to vector<8x128xf32>
    %524 = arith.addf %523, %18 : vector<8x128xf32>
    %525 = arith.cmpf ogt, %524, %520 : vector<8x128xf32>
    %c5_i32_89 = arith.constant 5 : i32
    %526 = vector.broadcast %c5_i32_89 : i32 to vector<8x128xi32>
    %527 = arith.select %525, %526, %519 : vector<8x128xi1>, vector<8x128xi32>
    %528 = arith.maximumf %520, %524 : vector<8x128xf32>
    %529 = vector.extract_strided_slice %475 {offsets = [6, 0], sizes = [1, 128], strides = [1, 1]} : vector<8x128xf32> to vector<1x128xf32>
    %530 = vector.shape_cast %529 : vector<1x128xf32> to vector<1x128xf32>
    %531 = vector.broadcast %530 : vector<1x128xf32> to vector<8x128xf32>
    %532 = arith.addf %531, %21 : vector<8x128xf32>
    %533 = arith.cmpf ogt, %532, %528 : vector<8x128xf32>
    %c6_i32_90 = arith.constant 6 : i32
    %534 = vector.broadcast %c6_i32_90 : i32 to vector<8x128xi32>
    %535 = arith.select %533, %534, %527 : vector<8x128xi1>, vector<8x128xi32>
    %536 = arith.maximumf %528, %532 : vector<8x128xf32>
    %537 = vector.extract_strided_slice %475 {offsets = [7, 0], sizes = [1, 128], strides = [1, 1]} : vector<8x128xf32> to vector<1x128xf32>
    %538 = vector.shape_cast %537 : vector<1x128xf32> to vector<1x128xf32>
    %539 = vector.broadcast %538 : vector<1x128xf32> to vector<8x128xf32>
    %540 = arith.addf %539, %24 : vector<8x128xf32>
    %541 = arith.cmpf ogt, %540, %536 : vector<8x128xf32>
    %c7_i32_91 = arith.constant 7 : i32
    %542 = vector.broadcast %c7_i32_91 : i32 to vector<8x128xi32>
    %543 = arith.select %541, %542, %535 : vector<8x128xi1>, vector<8x128xi32>
    %544 = arith.maximumf %536, %540 : vector<8x128xf32>
    %545 = arith.index_cast %c6_i32_80 : i32 to index
    %c0_92 = arith.constant 0 : index
    %c0_93 = arith.constant 0 : index
    %546 = vector.load %arg6[%545, %c0_92, %c0_93] : memref<7x8x128xi32, #tpu.memory_space<vmem>>, vector<1x8x128xi32>
    %547 = vector.shape_cast %546 : vector<1x8x128xi32> to vector<8x128xi32>
    %548 = vector.shape_cast %543 : vector<8x128xi32> to vector<1x8x128xi32>
    tpu.vector_store %arg6[%545, %c0_92, %c0_93], %548 {strides = array<i32>} : memref<7x8x128xi32, #tpu.memory_space<vmem>>, vector<1x8x128xi32>,
    %549 = arith.addf %544, %484 : vector<8x128xf32>
    %550 = vector.extract_strided_slice %544 {offsets = [7, 0], sizes = [1, 128], strides = [1, 1]} : vector<8x128xf32> to vector<1x128xf32>
    %c7_i32_94 = arith.constant 7 : i32
    %c0_95 = arith.constant 0 : index
    %c0_96 = arith.constant 0 : index
    %551 = vector.load %arg4[%c0_95, %c0_96] : memref<1x128xf32, #tpu.memory_space<vmem>>, vector<1x128xf32>
    tpu.vector_store %arg4[%c0_95, %c0_96], %550 {strides = array<i32>} : memref<1x128xf32, #tpu.memory_space<vmem>>, vector<1x128xf32>,
    %c6 = arith.constant 6 : index
    %c0_97 = arith.constant 0 : index
    %c0_98 = arith.constant 0 : index
    %552 = vector.load %arg6[%c6, %c0_97, %c0_98] : memref<7x8x128xi32, #tpu.memory_space<vmem>>, vector<1x8x128xi32>
    %553 = vector.shape_cast %552 : vector<1x8x128xi32> to vector<8x128xi32>
    %554 = vector.extract_strided_slice %553 {offsets = [7, 0], sizes = [1, 128], strides = [1, 1]} : vector<8x128xi32> to vector<1x128xi32>
    %c6_99 = arith.constant 6 : index
    %c0_100 = arith.constant 0 : index
    %555 = vector.load %arg5[%c6_99, %c0_100] : memref<7x128xi32, #tpu.memory_space<vmem>>, vector<1x128xi32>
    tpu.vector_store %arg5[%c6_99, %c0_100], %554 {strides = array<i32>} : memref<7x128xi32, #tpu.memory_space<vmem>>, vector<1x128xi32>,
    %c0_i32_101 = arith.constant 0 : i32
    %c6_i32_102 = arith.constant 6 : i32
    %556 = arith.subi %c6_i32_102, %c0_i32_101 : i32
    %557 = arith.index_cast %556 : i32 to index
    %c0_103 = arith.constant 0 : index
    %c0_104 = arith.constant 0 : index
    %558 = vector.load %arg6[%557, %c0_103, %c0_104] : memref<7x8x128xi32, #tpu.memory_space<vmem>>, vector<1x8x128xi32>
    %559 = vector.shape_cast %558 : vector<1x8x128xi32> to vector<8x128xi32>
    %560 = vector.extract_strided_slice %559 {offsets = [0, 0], sizes = [1, 128], strides = [1, 1]} : vector<8x128xi32> to vector<1x128xi32>
    %c1_i32_105 = arith.constant 1 : i32
    %561 = vector.broadcast %c1_i32_105 : i32 to vector<1x128xi32>
    %562 = arith.cmpi eq, %554, %561 : vector<1x128xi32>
    %563 = vector.extract_strided_slice %559 {offsets = [1, 0], sizes = [1, 128], strides = [1, 1]} : vector<8x128xi32> to vector<1x128xi32>
    %564 = arith.select %562, %563, %560 : vector<1x128xi1>, vector<1x128xi32>
    %c2_i32_106 = arith.constant 2 : i32
    %565 = vector.broadcast %c2_i32_106 : i32 to vector<1x128xi32>
    %566 = arith.cmpi eq, %554, %565 : vector<1x128xi32>
    %567 = vector.extract_strided_slice %559 {offsets = [2, 0], sizes = [1, 128], strides = [1, 1]} : vector<8x128xi32> to vector<1x128xi32>
    %568 = arith.select %566, %567, %564 : vector<1x128xi1>, vector<1x128xi32>
    %c3_i32_107 = arith.constant 3 : i32
    %569 = vector.broadcast %c3_i32_107 : i32 to vector<1x128xi32>
    %570 = arith.cmpi eq, %554, %569 : vector<1x128xi32>
    %571 = vector.extract_strided_slice %559 {offsets = [3, 0], sizes = [1, 128], strides = [1, 1]} : vector<8x128xi32> to vector<1x128xi32>
    %572 = arith.select %570, %571, %568 : vector<1x128xi1>, vector<1x128xi32>
    %c4_i32_108 = arith.constant 4 : i32
    %573 = vector.broadcast %c4_i32_108 : i32 to vector<1x128xi32>
    %574 = arith.cmpi eq, %554, %573 : vector<1x128xi32>
    %575 = vector.extract_strided_slice %559 {offsets = [4, 0], sizes = [1, 128], strides = [1, 1]} : vector<8x128xi32> to vector<1x128xi32>
    %576 = arith.select %574, %575, %572 : vector<1x128xi1>, vector<1x128xi32>
    %c5_i32_109 = arith.constant 5 : i32
    %577 = vector.broadcast %c5_i32_109 : i32 to vector<1x128xi32>
    %578 = arith.cmpi eq, %554, %577 : vector<1x128xi32>
    %579 = vector.extract_strided_slice %559 {offsets = [5, 0], sizes = [1, 128], strides = [1, 1]} : vector<8x128xi32> to vector<1x128xi32>
    %580 = arith.select %578, %579, %576 : vector<1x128xi1>, vector<1x128xi32>
    %c6_i32_110 = arith.constant 6 : i32
    %581 = vector.broadcast %c6_i32_110 : i32 to vector<1x128xi32>
    %582 = arith.cmpi eq, %554, %581 : vector<1x128xi32>
    %583 = vector.extract_strided_slice %559 {offsets = [6, 0], sizes = [1, 128], strides = [1, 1]} : vector<8x128xi32> to vector<1x128xi32>
    %584 = arith.select %582, %583, %580 : vector<1x128xi1>, vector<1x128xi32>
    %c7_i32_111 = arith.constant 7 : i32
    %585 = vector.broadcast %c7_i32_111 : i32 to vector<1x128xi32>
    %586 = arith.cmpi eq, %554, %585 : vector<1x128xi32>
    %587 = vector.extract_strided_slice %559 {offsets = [7, 0], sizes = [1, 128], strides = [1, 1]} : vector<8x128xi32> to vector<1x128xi32>
    %588 = arith.select %586, %587, %584 : vector<1x128xi1>, vector<1x128xi32>
    %c1_i32_112 = arith.constant 1 : i32
    %589 = arith.subi %556, %c1_i32_112 : i32
    %590 = arith.index_cast %589 : i32 to index
    %c0_113 = arith.constant 0 : index
    %591 = vector.load %arg5[%590, %c0_113] : memref<7x128xi32, #tpu.memory_space<vmem>>, vector<1x128xi32>
    tpu.vector_store %arg5[%590, %c0_113], %588 {strides = array<i32>} : memref<7x128xi32, #tpu.memory_space<vmem>>, vector<1x128xi32>,
    %c1_i32_114 = arith.constant 1 : i32
    %c6_i32_115 = arith.constant 6 : i32
    %592 = arith.subi %c6_i32_115, %c1_i32_114 : i32
    %593 = arith.index_cast %592 : i32 to index
    %c0_116 = arith.constant 0 : index
    %c0_117 = arith.constant 0 : index
    %594 = vector.load %arg6[%593, %c0_116, %c0_117] : memref<7x8x128xi32, #tpu.memory_space<vmem>>, vector<1x8x128xi32>
    %595 = vector.shape_cast %594 : vector<1x8x128xi32> to vector<8x128xi32>
    %596 = vector.extract_strided_slice %595 {offsets = [0, 0], sizes = [1, 128], strides = [1, 1]} : vector<8x128xi32> to vector<1x128xi32>
    %c1_i32_118 = arith.constant 1 : i32
    %597 = vector.broadcast %c1_i32_118 : i32 to vector<1x128xi32>
    %598 = arith.cmpi eq, %588, %597 : vector<1x128xi32>
    %599 = vector.extract_strided_slice %595 {offsets = [1, 0], sizes = [1, 128], strides = [1, 1]} : vector<8x128xi32> to vector<1x128xi32>
    %600 = arith.select %598, %599, %596 : vector<1x128xi1>, vector<1x128xi32>
    %c2_i32_119 = arith.constant 2 : i32
    %601 = vector.broadcast %c2_i32_119 : i32 to vector<1x128xi32>
    %602 = arith.cmpi eq, %588, %601 : vector<1x128xi32>
    %603 = vector.extract_strided_slice %595 {offsets = [2, 0], sizes = [1, 128], strides = [1, 1]} : vector<8x128xi32> to vector<1x128xi32>
    %604 = arith.select %602, %603, %600 : vector<1x128xi1>, vector<1x128xi32>
    %c3_i32_120 = arith.constant 3 : i32
    %605 = vector.broadcast %c3_i32_120 : i32 to vector<1x128xi32>
    %606 = arith.cmpi eq, %588, %605 : vector<1x128xi32>
    %607 = vector.extract_strided_slice %595 {offsets = [3, 0], sizes = [1, 128], strides = [1, 1]} : vector<8x128xi32> to vector<1x128xi32>
    %608 = arith.select %606, %607, %604 : vector<1x128xi1>, vector<1x128xi32>
    %c4_i32_121 = arith.constant 4 : i32
    %609 = vector.broadcast %c4_i32_121 : i32 to vector<1x128xi32>
    %610 = arith.cmpi eq, %588, %609 : vector<1x128xi32>
    %611 = vector.extract_strided_slice %595 {offsets = [4, 0], sizes = [1, 128], strides = [1, 1]} : vector<8x128xi32> to vector<1x128xi32>
    %612 = arith.select %610, %611, %608 : vector<1x128xi1>, vector<1x128xi32>
    %c5_i32_122 = arith.constant 5 : i32
    %613 = vector.broadcast %c5_i32_122 : i32 to vector<1x128xi32>
    %614 = arith.cmpi eq, %588, %613 : vector<1x128xi32>
    %615 = vector.extract_strided_slice %595 {offsets = [5, 0], sizes = [1, 128], strides = [1, 1]} : vector<8x128xi32> to vector<1x128xi32>
    %616 = arith.select %614, %615, %612 : vector<1x128xi1>, vector<1x128xi32>
    %c6_i32_123 = arith.constant 6 : i32
    %617 = vector.broadcast %c6_i32_123 : i32 to vector<1x128xi32>
    %618 = arith.cmpi eq, %588, %617 : vector<1x128xi32>
    %619 = vector.extract_strided_slice %595 {offsets = [6, 0], sizes = [1, 128], strides = [1, 1]} : vector<8x128xi32> to vector<1x128xi32>
    %620 = arith.select %618, %619, %616 : vector<1x128xi1>, vector<1x128xi32>
    %c7_i32_124 = arith.constant 7 : i32
    %621 = vector.broadcast %c7_i32_124 : i32 to vector<1x128xi32>
    %622 = arith.cmpi eq, %588, %621 : vector<1x128xi32>
    %623 = vector.extract_strided_slice %595 {offsets = [7, 0], sizes = [1, 128], strides = [1, 1]} : vector<8x128xi32> to vector<1x128xi32>
    %624 = arith.select %622, %623, %620 : vector<1x128xi1>, vector<1x128xi32>
    %c1_i32_125 = arith.constant 1 : i32
    %625 = arith.subi %592, %c1_i32_125 : i32
    %626 = arith.index_cast %625 : i32 to index
    %c0_126 = arith.constant 0 : index
    %627 = vector.load %arg5[%626, %c0_126] : memref<7x128xi32, #tpu.memory_space<vmem>>, vector<1x128xi32>
    tpu.vector_store %arg5[%626, %c0_126], %624 {strides = array<i32>} : memref<7x128xi32, #tpu.memory_space<vmem>>, vector<1x128xi32>,
    %c2_i32_127 = arith.constant 2 : i32
    %c6_i32_128 = arith.constant 6 : i32
    %628 = arith.subi %c6_i32_128, %c2_i32_127 : i32
    %629 = arith.index_cast %628 : i32 to index
    %c0_129 = arith.constant 0 : index
    %c0_130 = arith.constant 0 : index
    %630 = vector.load %arg6[%629, %c0_129, %c0_130] : memref<7x8x128xi32, #tpu.memory_space<vmem>>, vector<1x8x128xi32>
    %631 = vector.shape_cast %630 : vector<1x8x128xi32> to vector<8x128xi32>
    %632 = vector.extract_strided_slice %631 {offsets = [0, 0], sizes = [1, 128], strides = [1, 1]} : vector<8x128xi32> to vector<1x128xi32>
    %c1_i32_131 = arith.constant 1 : i32
    %633 = vector.broadcast %c1_i32_131 : i32 to vector<1x128xi32>
    %634 = arith.cmpi eq, %624, %633 : vector<1x128xi32>
    %635 = vector.extract_strided_slice %631 {offsets = [1, 0], sizes = [1, 128], strides = [1, 1]} : vector<8x128xi32> to vector<1x128xi32>
    %636 = arith.select %634, %635, %632 : vector<1x128xi1>, vector<1x128xi32>
    %c2_i32_132 = arith.constant 2 : i32
    %637 = vector.broadcast %c2_i32_132 : i32 to vector<1x128xi32>
    %638 = arith.cmpi eq, %624, %637 : vector<1x128xi32>
    %639 = vector.extract_strided_slice %631 {offsets = [2, 0], sizes = [1, 128], strides = [1, 1]} : vector<8x128xi32> to vector<1x128xi32>
    %640 = arith.select %638, %639, %636 : vector<1x128xi1>, vector<1x128xi32>
    %c3_i32_133 = arith.constant 3 : i32
    %641 = vector.broadcast %c3_i32_133 : i32 to vector<1x128xi32>
    %642 = arith.cmpi eq, %624, %641 : vector<1x128xi32>
    %643 = vector.extract_strided_slice %631 {offsets = [3, 0], sizes = [1, 128], strides = [1, 1]} : vector<8x128xi32> to vector<1x128xi32>
    %644 = arith.select %642, %643, %640 : vector<1x128xi1>, vector<1x128xi32>
    %c4_i32_134 = arith.constant 4 : i32
    %645 = vector.broadcast %c4_i32_134 : i32 to vector<1x128xi32>
    %646 = arith.cmpi eq, %624, %645 : vector<1x128xi32>
    %647 = vector.extract_strided_slice %631 {offsets = [4, 0], sizes = [1, 128], strides = [1, 1]} : vector<8x128xi32> to vector<1x128xi32>
    %648 = arith.select %646, %647, %644 : vector<1x128xi1>, vector<1x128xi32>
    %c5_i32_135 = arith.constant 5 : i32
    %649 = vector.broadcast %c5_i32_135 : i32 to vector<1x128xi32>
    %650 = arith.cmpi eq, %624, %649 : vector<1x128xi32>
    %651 = vector.extract_strided_slice %631 {offsets = [5, 0], sizes = [1, 128], strides = [1, 1]} : vector<8x128xi32> to vector<1x128xi32>
    %652 = arith.select %650, %651, %648 : vector<1x128xi1>, vector<1x128xi32>
    %c6_i32_136 = arith.constant 6 : i32
    %653 = vector.broadcast %c6_i32_136 : i32 to vector<1x128xi32>
    %654 = arith.cmpi eq, %624, %653 : vector<1x128xi32>
    %655 = vector.extract_strided_slice %631 {offsets = [6, 0], sizes = [1, 128], strides = [1, 1]} : vector<8x128xi32> to vector<1x128xi32>
    %656 = arith.select %654, %655, %652 : vector<1x128xi1>, vector<1x128xi32>
    %c7_i32_137 = arith.constant 7 : i32
    %657 = vector.broadcast %c7_i32_137 : i32 to vector<1x128xi32>
    %658 = arith.cmpi eq, %624, %657 : vector<1x128xi32>
    %659 = vector.extract_strided_slice %631 {offsets = [7, 0], sizes = [1, 128], strides = [1, 1]} : vector<8x128xi32> to vector<1x128xi32>
    %660 = arith.select %658, %659, %656 : vector<1x128xi1>, vector<1x128xi32>
    %c1_i32_138 = arith.constant 1 : i32
    %661 = arith.subi %628, %c1_i32_138 : i32
    %662 = arith.index_cast %661 : i32 to index
    %c0_139 = arith.constant 0 : index
    %663 = vector.load %arg5[%662, %c0_139] : memref<7x128xi32, #tpu.memory_space<vmem>>, vector<1x128xi32>
    tpu.vector_store %arg5[%662, %c0_139], %660 {strides = array<i32>} : memref<7x128xi32, #tpu.memory_space<vmem>>, vector<1x128xi32>,
    %c3_i32_140 = arith.constant 3 : i32
    %c6_i32_141 = arith.constant 6 : i32
    %664 = arith.subi %c6_i32_141, %c3_i32_140 : i32
    %665 = arith.index_cast %664 : i32 to index
    %c0_142 = arith.constant 0 : index
    %c0_143 = arith.constant 0 : index
    %666 = vector.load %arg6[%665, %c0_142, %c0_143] : memref<7x8x128xi32, #tpu.memory_space<vmem>>, vector<1x8x128xi32>
    %667 = vector.shape_cast %666 : vector<1x8x128xi32> to vector<8x128xi32>
    %668 = vector.extract_strided_slice %667 {offsets = [0, 0], sizes = [1, 128], strides = [1, 1]} : vector<8x128xi32> to vector<1x128xi32>
    %c1_i32_144 = arith.constant 1 : i32
    %669 = vector.broadcast %c1_i32_144 : i32 to vector<1x128xi32>
    %670 = arith.cmpi eq, %660, %669 : vector<1x128xi32>
    %671 = vector.extract_strided_slice %667 {offsets = [1, 0], sizes = [1, 128], strides = [1, 1]} : vector<8x128xi32> to vector<1x128xi32>
    %672 = arith.select %670, %671, %668 : vector<1x128xi1>, vector<1x128xi32>
    %c2_i32_145 = arith.constant 2 : i32
    %673 = vector.broadcast %c2_i32_145 : i32 to vector<1x128xi32>
    %674 = arith.cmpi eq, %660, %673 : vector<1x128xi32>
    %675 = vector.extract_strided_slice %667 {offsets = [2, 0], sizes = [1, 128], strides = [1, 1]} : vector<8x128xi32> to vector<1x128xi32>
    %676 = arith.select %674, %675, %672 : vector<1x128xi1>, vector<1x128xi32>
    %c3_i32_146 = arith.constant 3 : i32
    %677 = vector.broadcast %c3_i32_146 : i32 to vector<1x128xi32>
    %678 = arith.cmpi eq, %660, %677 : vector<1x128xi32>
    %679 = vector.extract_strided_slice %667 {offsets = [3, 0], sizes = [1, 128], strides = [1, 1]} : vector<8x128xi32> to vector<1x128xi32>
    %680 = arith.select %678, %679, %676 : vector<1x128xi1>, vector<1x128xi32>
    %c4_i32_147 = arith.constant 4 : i32
    %681 = vector.broadcast %c4_i32_147 : i32 to vector<1x128xi32>
    %682 = arith.cmpi eq, %660, %681 : vector<1x128xi32>
    %683 = vector.extract_strided_slice %667 {offsets = [4, 0], sizes = [1, 128], strides = [1, 1]} : vector<8x128xi32> to vector<1x128xi32>
    %684 = arith.select %682, %683, %680 : vector<1x128xi1>, vector<1x128xi32>
    %c5_i32_148 = arith.constant 5 : i32
    %685 = vector.broadcast %c5_i32_148 : i32 to vector<1x128xi32>
    %686 = arith.cmpi eq, %660, %685 : vector<1x128xi32>
    %687 = vector.extract_strided_slice %667 {offsets = [5, 0], sizes = [1, 128], strides = [1, 1]} : vector<8x128xi32> to vector<1x128xi32>
    %688 = arith.select %686, %687, %684 : vector<1x128xi1>, vector<1x128xi32>
    %c6_i32_149 = arith.constant 6 : i32
    %689 = vector.broadcast %c6_i32_149 : i32 to vector<1x128xi32>
    %690 = arith.cmpi eq, %660, %689 : vector<1x128xi32>
    %691 = vector.extract_strided_slice %667 {offsets = [6, 0], sizes = [1, 128], strides = [1, 1]} : vector<8x128xi32> to vector<1x128xi32>
    %692 = arith.select %690, %691, %688 : vector<1x128xi1>, vector<1x128xi32>
    %c7_i32_150 = arith.constant 7 : i32
    %693 = vector.broadcast %c7_i32_150 : i32 to vector<1x128xi32>
    %694 = arith.cmpi eq, %660, %693 : vector<1x128xi32>
    %695 = vector.extract_strided_slice %667 {offsets = [7, 0], sizes = [1, 128], strides = [1, 1]} : vector<8x128xi32> to vector<1x128xi32>
    %696 = arith.select %694, %695, %692 : vector<1x128xi1>, vector<1x128xi32>
    %c1_i32_151 = arith.constant 1 : i32
    %697 = arith.subi %664, %c1_i32_151 : i32
    %698 = arith.index_cast %697 : i32 to index
    %c0_152 = arith.constant 0 : index
    %699 = vector.load %arg5[%698, %c0_152] : memref<7x128xi32, #tpu.memory_space<vmem>>, vector<1x128xi32>
    tpu.vector_store %arg5[%698, %c0_152], %696 {strides = array<i32>} : memref<7x128xi32, #tpu.memory_space<vmem>>, vector<1x128xi32>,
    %c4_i32_153 = arith.constant 4 : i32
    %c6_i32_154 = arith.constant 6 : i32
    %700 = arith.subi %c6_i32_154, %c4_i32_153 : i32
    %701 = arith.index_cast %700 : i32 to index
    %c0_155 = arith.constant 0 : index
    %c0_156 = arith.constant 0 : index
    %702 = vector.load %arg6[%701, %c0_155, %c0_156] : memref<7x8x128xi32, #tpu.memory_space<vmem>>, vector<1x8x128xi32>
    %703 = vector.shape_cast %702 : vector<1x8x128xi32> to vector<8x128xi32>
    %704 = vector.extract_strided_slice %703 {offsets = [0, 0], sizes = [1, 128], strides = [1, 1]} : vector<8x128xi32> to vector<1x128xi32>
    %c1_i32_157 = arith.constant 1 : i32
    %705 = vector.broadcast %c1_i32_157 : i32 to vector<1x128xi32>
    %706 = arith.cmpi eq, %696, %705 : vector<1x128xi32>
    %707 = vector.extract_strided_slice %703 {offsets = [1, 0], sizes = [1, 128], strides = [1, 1]} : vector<8x128xi32> to vector<1x128xi32>
    %708 = arith.select %706, %707, %704 : vector<1x128xi1>, vector<1x128xi32>
    %c2_i32_158 = arith.constant 2 : i32
    %709 = vector.broadcast %c2_i32_158 : i32 to vector<1x128xi32>
    %710 = arith.cmpi eq, %696, %709 : vector<1x128xi32>
    %711 = vector.extract_strided_slice %703 {offsets = [2, 0], sizes = [1, 128], strides = [1, 1]} : vector<8x128xi32> to vector<1x128xi32>
    %712 = arith.select %710, %711, %708 : vector<1x128xi1>, vector<1x128xi32>
    %c3_i32_159 = arith.constant 3 : i32
    %713 = vector.broadcast %c3_i32_159 : i32 to vector<1x128xi32>
    %714 = arith.cmpi eq, %696, %713 : vector<1x128xi32>
    %715 = vector.extract_strided_slice %703 {offsets = [3, 0], sizes = [1, 128], strides = [1, 1]} : vector<8x128xi32> to vector<1x128xi32>
    %716 = arith.select %714, %715, %712 : vector<1x128xi1>, vector<1x128xi32>
    %c4_i32_160 = arith.constant 4 : i32
    %717 = vector.broadcast %c4_i32_160 : i32 to vector<1x128xi32>
    %718 = arith.cmpi eq, %696, %717 : vector<1x128xi32>
    %719 = vector.extract_strided_slice %703 {offsets = [4, 0], sizes = [1, 128], strides = [1, 1]} : vector<8x128xi32> to vector<1x128xi32>
    %720 = arith.select %718, %719, %716 : vector<1x128xi1>, vector<1x128xi32>
    %c5_i32_161 = arith.constant 5 : i32
    %721 = vector.broadcast %c5_i32_161 : i32 to vector<1x128xi32>
    %722 = arith.cmpi eq, %696, %721 : vector<1x128xi32>
    %723 = vector.extract_strided_slice %703 {offsets = [5, 0], sizes = [1, 128], strides = [1, 1]} : vector<8x128xi32> to vector<1x128xi32>
    %724 = arith.select %722, %723, %720 : vector<1x128xi1>, vector<1x128xi32>
    %c6_i32_162 = arith.constant 6 : i32
    %725 = vector.broadcast %c6_i32_162 : i32 to vector<1x128xi32>
    %726 = arith.cmpi eq, %696, %725 : vector<1x128xi32>
    %727 = vector.extract_strided_slice %703 {offsets = [6, 0], sizes = [1, 128], strides = [1, 1]} : vector<8x128xi32> to vector<1x128xi32>
    %728 = arith.select %726, %727, %724 : vector<1x128xi1>, vector<1x128xi32>
    %c7_i32_163 = arith.constant 7 : i32
    %729 = vector.broadcast %c7_i32_163 : i32 to vector<1x128xi32>
    %730 = arith.cmpi eq, %696, %729 : vector<1x128xi32>
    %731 = vector.extract_strided_slice %703 {offsets = [7, 0], sizes = [1, 128], strides = [1, 1]} : vector<8x128xi32> to vector<1x128xi32>
    %732 = arith.select %730, %731, %728 : vector<1x128xi1>, vector<1x128xi32>
    %c1_i32_164 = arith.constant 1 : i32
    %733 = arith.subi %700, %c1_i32_164 : i32
    %734 = arith.index_cast %733 : i32 to index
    %c0_165 = arith.constant 0 : index
    %735 = vector.load %arg5[%734, %c0_165] : memref<7x128xi32, #tpu.memory_space<vmem>>, vector<1x128xi32>
    tpu.vector_store %arg5[%734, %c0_165], %732 {strides = array<i32>} : memref<7x128xi32, #tpu.memory_space<vmem>>, vector<1x128xi32>,
    %c5_i32_166 = arith.constant 5 : i32
    %c6_i32_167 = arith.constant 6 : i32
    %736 = arith.subi %c6_i32_167, %c5_i32_166 : i32
    %737 = arith.index_cast %736 : i32 to index
    %c0_168 = arith.constant 0 : index
    %c0_169 = arith.constant 0 : index
    %738 = vector.load %arg6[%737, %c0_168, %c0_169] : memref<7x8x128xi32, #tpu.memory_space<vmem>>, vector<1x8x128xi32>
    %739 = vector.shape_cast %738 : vector<1x8x128xi32> to vector<8x128xi32>
    %740 = vector.extract_strided_slice %739 {offsets = [0, 0], sizes = [1, 128], strides = [1, 1]} : vector<8x128xi32> to vector<1x128xi32>
    %c1_i32_170 = arith.constant 1 : i32
    %741 = vector.broadcast %c1_i32_170 : i32 to vector<1x128xi32>
    %742 = arith.cmpi eq, %732, %741 : vector<1x128xi32>
    %743 = vector.extract_strided_slice %739 {offsets = [1, 0], sizes = [1, 128], strides = [1, 1]} : vector<8x128xi32> to vector<1x128xi32>
    %744 = arith.select %742, %743, %740 : vector<1x128xi1>, vector<1x128xi32>
    %c2_i32_171 = arith.constant 2 : i32
    %745 = vector.broadcast %c2_i32_171 : i32 to vector<1x128xi32>
    %746 = arith.cmpi eq, %732, %745 : vector<1x128xi32>
    %747 = vector.extract_strided_slice %739 {offsets = [2, 0], sizes = [1, 128], strides = [1, 1]} : vector<8x128xi32> to vector<1x128xi32>
    %748 = arith.select %746, %747, %744 : vector<1x128xi1>, vector<1x128xi32>
    %c3_i32_172 = arith.constant 3 : i32
    %749 = vector.broadcast %c3_i32_172 : i32 to vector<1x128xi32>
    %750 = arith.cmpi eq, %732, %749 : vector<1x128xi32>
    %751 = vector.extract_strided_slice %739 {offsets = [3, 0], sizes = [1, 128], strides = [1, 1]} : vector<8x128xi32> to vector<1x128xi32>
    %752 = arith.select %750, %751, %748 : vector<1x128xi1>, vector<1x128xi32>
    %c4_i32_173 = arith.constant 4 : i32
    %753 = vector.broadcast %c4_i32_173 : i32 to vector<1x128xi32>
    %754 = arith.cmpi eq, %732, %753 : vector<1x128xi32>
    %755 = vector.extract_strided_slice %739 {offsets = [4, 0], sizes = [1, 128], strides = [1, 1]} : vector<8x128xi32> to vector<1x128xi32>
    %756 = arith.select %754, %755, %752 : vector<1x128xi1>, vector<1x128xi32>
    %c5_i32_174 = arith.constant 5 : i32
    %757 = vector.broadcast %c5_i32_174 : i32 to vector<1x128xi32>
    %758 = arith.cmpi eq, %732, %757 : vector<1x128xi32>
    %759 = vector.extract_strided_slice %739 {offsets = [5, 0], sizes = [1, 128], strides = [1, 1]} : vector<8x128xi32> to vector<1x128xi32>
    %760 = arith.select %758, %759, %756 : vector<1x128xi1>, vector<1x128xi32>
    %c6_i32_175 = arith.constant 6 : i32
    %761 = vector.broadcast %c6_i32_175 : i32 to vector<1x128xi32>
    %762 = arith.cmpi eq, %732, %761 : vector<1x128xi32>
    %763 = vector.extract_strided_slice %739 {offsets = [6, 0], sizes = [1, 128], strides = [1, 1]} : vector<8x128xi32> to vector<1x128xi32>
    %764 = arith.select %762, %763, %760 : vector<1x128xi1>, vector<1x128xi32>
    %c7_i32_176 = arith.constant 7 : i32
    %765 = vector.broadcast %c7_i32_176 : i32 to vector<1x128xi32>
    %766 = arith.cmpi eq, %732, %765 : vector<1x128xi32>
    %767 = vector.extract_strided_slice %739 {offsets = [7, 0], sizes = [1, 128], strides = [1, 1]} : vector<8x128xi32> to vector<1x128xi32>
    %768 = arith.select %766, %767, %764 : vector<1x128xi1>, vector<1x128xi32>
    %c1_i32_177 = arith.constant 1 : i32
    %769 = arith.subi %736, %c1_i32_177 : i32
    %770 = arith.index_cast %769 : i32 to index
    %c0_178 = arith.constant 0 : index
    %771 = vector.load %arg5[%770, %c0_178] : memref<7x128xi32, #tpu.memory_space<vmem>>, vector<1x128xi32>
    tpu.vector_store %arg5[%770, %c0_178], %768 {strides = array<i32>} : memref<7x128xi32, #tpu.memory_space<vmem>>, vector<1x128xi32>,
    %c6_i32_179 = arith.constant 6 : i32
    return
  }
  func.func @transform_0(%arg0: i32) -> (i32, i32) {
    %c0_i32 = arith.constant 0 : i32
    %c0_i32_0 = arith.constant 0 : i32
    %c0_i32_1 = arith.constant 0 : i32
    return %c0_i32, %c0_i32_0 : i32, i32
  }
  func.func @transform_1(%arg0: i32) -> (i32, i32, i32) {
    %c0_i32 = arith.constant 0 : i32
    %c0_i32_0 = arith.constant 0 : i32
    %c0_i32_1 = arith.constant 0 : i32
    return %c0_i32, %c0_i32_0, %arg0 : i32, i32, i32
  }
  func.func @transform_2(%arg0: i32) -> (i32, i32) {
    %c0_i32 = arith.constant 0 : i32
    %c0_i32_0 = arith.constant 0 : i32
    return %c0_i32, %arg0 : i32, i32
  }
  func.func @transform_3(%arg0: i32) -> (i32, i32) {
    %c0_i32 = arith.constant 0 : i32
    %c0_i32_0 = arith.constant 0 : i32
    return %c0_i32, %arg0 : i32, i32
  }
  func.func @transform_4(%arg0: i32) -> (i32, i32) {
    %c0_i32 = arith.constant 0 : i32
    %c0_i32_0 = arith.constant 0 : i32
    return %c0_i32, %arg0 : i32, i32
  }
}

</mosaic_0001>

<bundles_post_ra>
// kernel: crf_viterbi_decode.2
= control target key start
LH: loop header
LB: loop body
LE: loop exit
PB: predicated region body
PF: predicated region fallthrough
CT: control target
= control target key end

     0   :  { %s937_s0 = inlined_call_operand.vmem [shape: f32[8,8], index: 0, kind: input, shape index: {}]   ;;  %s938_s1 = inlined_call_operand.vmem [shape: f32[8,8,2], index: 1, kind: input, shape index: {}]   ;;  %s939_s2 = inlined_call_operand.<no memory space> [shape: f32[], index: 2, kind: input, shape index: {}]   ;;  %s940_s3 = inlined_call_operand.vmem [shape: f32[8,2], index: 3, kind: input, shape index: {}]   ;;  %s941_s4 = inlined_call_operand.vmem [shape: f32[1,128], index: 4, kind: output, shape index: {0}]   ;;  %s942_s5 = inlined_call_operand.vmem [shape: s32[7,128], index: 5, kind: output, shape index: {1}]  }
   0x1   :  { %v682_v0 = vstv %s939_s2 }
   0x2   :  { %v114_v1 = vld [vmem:[%s937_s0] sm:$0xff]  ;;  %v640_v2 = vmov 0   ;;  %v641_v3 = vmov 2   ;;  %v642_v4 = vmov 4   ;;  %v643_v5 = vmov 1   ;;  %v609_v38 = vld [vmem:[%s938_s1 + $0x8] sm:$0xff] }
   0x3   :  { %625 = vset.pattern.permute.xlu0 %v640_v2  ;;  %627 = vset.pattern.permute.xlu1 %v641_v3  ;;  %v644_v6 = vmov 3   ;;  %v645_v7 = vmov 5   ;;  %v646_v8 = vmov 6   ;;  %v647_v9 = vmov 7   ;;  %v105_v12 = vld [vmem:[%s940_s3] sm:$0xff] }
   0x4   :  { %117 = vperm.xlu0 %625, %v114_v1   ;;  %125 = vperm.xlu1 %627, %v114_v1   ;;  %v20_v10 = vlaneseq  ;;  %v648_v18 = vmov -10000.0  }
   0x5   :  { %629 = vset.pattern.permute.xlu2 %v642_v4 }
   0x6   :  { %133 = vperm.xlu2 %629, %v114_v1   ;;  %v688_v11 = vand.u32 127, %v20_v10  ;;  %v149_v14 = vshrl.u32 %v20_v10, 7 }
   0x8   :  { %vm23_vm0 = vcmp.lt.s32.totalorder %v688_v11, 2  ;;  %vm150_vm1 = vcmp.eq.s32.totalorder %v149_v14, 6 }
   0x9   :  { %v110_v13 = vsel %vm23_vm0, %v105_v12, %v682_v0  ;;  %v151_v19 = vsel %vm150_vm1, 0.0, %v648_v18  ;;  %v34_v46 = vsel %vm23_vm0, %v609_v38, %v682_v0 }
   0xa   :  { %113 = vst [vmem:[#allocation14] sm:$0xff] %v110_v13  ;;  %v157_v20 = vperm.slane %v151_v19, 0  ;;  %v159_v21 = vperm.slane %v151_v19, 1  ;;  %v164_v23 = vperm.slane %v151_v19, 2  ;;  %v169_v28 = vperm.slane %v151_v19, 3 }
   0xb   :  { %v174_v30 = vperm.slane %v151_v19, 4  ;;  %v179_v34 = vperm.slane %v151_v19, 5  ;;  %v184_v35 = vperm.slane %v151_v19, 6  ;;  %v189_v39 = vperm.slane %v151_v19, 7 }
   0xc   :  { %626 = vset.pattern.permute.xlu0 %v643_v5  ;;  %628 = vset.pattern.permute.xlu1 %v644_v6  ;;  %v610_v5 = vld [vmem:[%s938_s1 + $0x10] sm:$0xff] }
   0xd   :  { %121 = vperm.xlu0 %626, %v114_v1   ;;  %129 = vperm.xlu1 %628, %v114_v1   ;;  %v45_v18 = vsel %vm23_vm0, %v610_v5, %v682_v0 }
   0xe   :  { %630 = vset.pattern.permute.xlu2 %v645_v7 }
   0xf   :  { %137 = vperm.xlu2 %630, %v114_v1  }
  0x11   :  { %v634_v44 = vld [vmem:[#allocation14 + $0x1] ss:$0 sm:$0xff]  ;;  %v635_v10 = vld [vmem:[#allocation14 + $0x2] ss:$0 sm:$0xff] }
  0x12   :  { %v156_v50 = vmul.f32 %v634_v44, %v34_v46 }
  0x15   :  { %631 = vset.pattern.permute.xlu1 %v646_v8  ;;  %633 = vset.pattern.permute.xlu0 %v647_v9 }
  0x16   :  { %141 = vperm.xlu1 %631, %v114_v1  }
  0x17   :  { %632 = vset.pattern.permute.xlu2 %v647_v9 }
  0x18   :  { %145 = vperm.xlu2 %632, %v114_v1  }
  0x60   :  { %v697_v15 = vpop.permute.xlu2 %133 }
  0x61   :  { %v175_v36 = vadd.f32 %v174_v30, %v697_v15 }
  0x69   :  { %v703_v22 = vpop.permute.xlu2 %137 }
  0x6a   :  { %v180_v41 = vadd.f32 %v179_v34, %v703_v22 }
  0x72   :  { %v717_v40 = vpop.permute.xlu2 %145 }
  0x73   :  { %v190_v48 = vadd.f32 %v189_v39, %v717_v40 }
  0x76   :  { %v699_v16 = vpop.permute.xlu0 %117  ;;  %v701_v17 = vpop.permute.xlu1 %125 }
  0x77   :  { %v158_v26 = vadd.f32 %v157_v20, %v699_v16  ;;  %v165_v29 = vadd.f32 %v164_v23, %v701_v17 }
  0x7f   :  { %v705_v24 = vpop.permute.xlu0 %121  ;;  %v707_v25 = vpop.permute.xlu1 %129 }
  0x80   :  { %v160_v27 = vadd.f32 %v159_v21, %v705_v24  ;;  %v170_v33 = vadd.f32 %v169_v28, %v707_v25 }
  0x82   :  { %v163_v31 = vmax.f32 %v158_v26, %v160_v27  ;;  %v200_v26 = vmul.f32 %v635_v10, %v45_v18 }
  0x84   :  { %v168_v32 = vmax.f32 %v163_v31, %v165_v29 }
  0x86   :  { %v173_v37 = vmax.f32 %v168_v32, %v170_v33 }
  0x88   :  { %v720_v42 = vpop.permute.xlu1 %141  ;;  %v178_v43 = vmax.f32 %v173_v37, %v175_v36 }
  0x89   :  { %v185_v45 = vadd.f32 %v184_v35, %v720_v42 }
  0x8a   :  { %v183_v47 = vmax.f32 %v178_v43, %v180_v41 }
  0x8c   :  { %v188_v49 = vmax.f32 %v183_v47, %v185_v45 }
  0x8e   :  { %v193_v51 = vmax.f32 %v188_v49, %v190_v48  ;;  %v611_v49 = vld [vmem:[%s938_s1 + $0x18] sm:$0xff] }
  0x90   :  { %v195_v52 = vadd.f32 %v193_v51, %v156_v50 }
  0x92   :  { %v201_v53 = vperm.slane %v195_v52, 0  ;;  %v203_v54 = vperm.slane %v195_v52, 1  ;;  %v208_v55 = vperm.slane %v195_v52, 2  ;;  %v213_v58 = vperm.slane %v195_v52, 3 }
  0x93   :  { %v218_v61 = vperm.slane %v195_v52, 4  ;;  %v223_v3 = vperm.slane %v195_v52, 5  ;;  %v228_v8 = vperm.slane %v195_v52, 6  ;;  %v233_v14 = vperm.slane %v195_v52, 7 }
  0x94   :  { %v202_v56 = vadd.f32 %v201_v53, %v699_v16  ;;  %v204_v57 = vadd.f32 %v203_v54, %v705_v24  ;;  %v209_v60 = vadd.f32 %v208_v55, %v701_v17  ;;  %v214_v1 = vadd.f32 %v213_v58, %v707_v25  ;;  %v636_v54 = vld [vmem:[#allocation14 + $0x3] ss:$0 sm:$0xff] }
  0x95   :  { %v219_v7 = vadd.f32 %v218_v61, %v697_v15  ;;  %v224_v13 = vadd.f32 %v223_v3, %v703_v22  ;;  %v229_v21 = vadd.f32 %v228_v8, %v720_v42  ;;  %v234_v28 = vadd.f32 %v233_v14, %v717_v40 }
  0x96   :  { %vm205_vm2 = vcmp.gt.f32.partialorder %v204_v57, %v202_v56  ;;  %v207_v59 = vmax.f32 %v202_v56, %v204_v57  ;;  %v56_v58 = vsel %vm23_vm0, %v611_v49, %v682_v0 }
  0x97   :  { %v206_v62 = vsel %vm205_vm2, 1, %v640_v2 }
  0x98   :  { %vm210_vm3 = vcmp.gt.f32.partialorder %v209_v60, %v207_v59  ;;  %v212_v63 = vmax.f32 %v207_v59, %v209_v60 }
  0x99   :  { %v211_v4 = vsel %vm210_vm3, 2, %v206_v62 }
  0x9a   :  { %vm215_vm4 = vcmp.gt.f32.partialorder %v214_v1, %v212_v63  ;;  %v217_v6 = vmax.f32 %v212_v63, %v214_v1  ;;  %v245_v63 = vmul.f32 %v636_v54, %v56_v58 }
  0x9b   :  { %v216_v9 = vsel %vm215_vm4, 3, %v211_v4 }
  0x9c   :  { %vm220_vm5 = vcmp.gt.f32.partialorder %v219_v7, %v217_v6  ;;  %v222_v12 = vmax.f32 %v217_v6, %v219_v7 }
  0x9d   :  { %v221_v19 = vsel %vm220_vm5, 4, %v216_v9 }
  0x9e   :  { %vm225_vm6 = vcmp.gt.f32.partialorder %v224_v13, %v222_v12  ;;  %v227_v20 = vmax.f32 %v222_v12, %v224_v13 }
  0x9f   :  { %v226_v23 = vsel %vm225_vm6, 5, %v221_v19 }
  0xa0   :  { %vm230_vm7 = vcmp.gt.f32.partialorder %v229_v21, %v227_v20  ;;  %v232_v27 = vmax.f32 %v227_v20, %v229_v21 }
  0xa1   :  { %v231_v29 = vsel %vm230_vm7, 6, %v226_v23 }
  0xa2   :  { %vm235_vm8 = vcmp.gt.f32.partialorder %v234_v28, %v232_v27  ;;  %v237_v30 = vmax.f32 %v232_v27, %v234_v28 }
  0xa3   :  { %v742_v31 = vsel %vm235_vm8, 7, %v231_v29  ;;  %v612_v29 = vld [vmem:[%s938_s1 + $0x20] sm:$0xff] }
  0xa4   :  { %v240_v32 = vadd.f32 %v237_v30, %v200_v26 }
  0xa6   :  { %v246_v33 = vperm.slane %v240_v32, 0  ;;  %v248_v34 = vperm.slane %v240_v32, 1  ;;  %v253_v35 = vperm.slane %v240_v32, 2  ;;  %v258_v38 = vperm.slane %v240_v32, 3 }
  0xa7   :  { %v263_v43 = vperm.slane %v240_v32, 4  ;;  %v268_v47 = vperm.slane %v240_v32, 5  ;;  %v273_v52 = vperm.slane %v240_v32, 6  ;;  %v278_v57 = vperm.slane %v240_v32, 7 }
  0xa8   :  { %v247_v36 = vadd.f32 %v246_v33, %v699_v16  ;;  %v249_v37 = vadd.f32 %v248_v34, %v705_v24  ;;  %v254_v41 = vadd.f32 %v253_v35, %v701_v17  ;;  %v259_v46 = vadd.f32 %v258_v38, %v707_v25  ;;  %v637_v35 = vld [vmem:[#allocation14 + $0x4] ss:$0 sm:$0xff] }
  0xa9   :  { %v264_v51 = vadd.f32 %v263_v43, %v697_v15  ;;  %v269_v56 = vadd.f32 %v268_v47, %v703_v22  ;;  %v274_v61 = vadd.f32 %v273_v52, %v720_v42  ;;  %v279_v3 = vadd.f32 %v278_v57, %v717_v40 }
  0xaa   :  { %vm250_vm9 = vcmp.gt.f32.partialorder %v249_v37, %v247_v36  ;;  %v252_v39 = vmax.f32 %v247_v36, %v249_v37 }
  0xab   :  { %v251_v44 = vsel %vm250_vm9, 1, %v640_v2 }
  0xac   :  { %vm255_vm10 = vcmp.gt.f32.partialorder %v254_v41, %v252_v39  ;;  %v257_v45 = vmax.f32 %v252_v39, %v254_v41  ;;  %v67_v39 = vsel %vm23_vm0, %v612_v29, %v682_v0 }
  0xad   :  { %v256_v48 = vsel %vm255_vm10, 2, %v251_v44 }
  0xae   :  { %vm260_vm11 = vcmp.gt.f32.partialorder %v259_v46, %v257_v45  ;;  %v262_v50 = vmax.f32 %v257_v45, %v259_v46  ;;  %v290_v46 = vmul.f32 %v637_v35, %v67_v39 }
  0xaf   :  { %v261_v53 = vsel %vm260_vm11, 3, %v256_v48 }
  0xb0   :  { %vm265_vm12 = vcmp.gt.f32.partialorder %v264_v51, %v262_v50  ;;  %v267_v55 = vmax.f32 %v262_v50, %v264_v51 }
  0xb1   :  { %v266_v59 = vsel %vm265_vm12, 4, %v261_v53 }
  0xb2   :  { %vm270_vm13 = vcmp.gt.f32.partialorder %v269_v56, %v267_v55  ;;  %v272_v60 = vmax.f32 %v267_v55, %v269_v56 }
  0xb3   :  { %v271_v62 = vsel %vm270_vm13, 5, %v266_v59 }
  0xb4   :  { %vm275_vm14 = vcmp.gt.f32.partialorder %v274_v61, %v272_v60  ;;  %v277_v1 = vmax.f32 %v272_v60, %v274_v61 }
  0xb5   :  { %v276_v4 = vsel %vm275_vm14, 6, %v271_v62 }
  0xb6   :  { %vm280_vm15 = vcmp.gt.f32.partialorder %v279_v3, %v277_v1  ;;  %v282_v5 = vmax.f32 %v277_v1, %v279_v3  ;;  %v613_v3 = vld [vmem:[%s938_s1 + $0x28] sm:$0xff] }
  0xb7   :  { %v759_v6 = vsel %vm280_vm15, 7, %v276_v4 }
  0xb8   :  { %v285_v7 = vadd.f32 %v282_v5, %v245_v63 }
  0xba   :  { %v291_v8 = vperm.slane %v285_v7, 0  ;;  %v293_v9 = vperm.slane %v285_v7, 1  ;;  %v298_v10 = vperm.slane %v285_v7, 2  ;;  %v303_v14 = vperm.slane %v285_v7, 3 }
  0xbb   :  { %v308_v20 = vperm.slane %v285_v7, 4  ;;  %v313_v27 = vperm.slane %v285_v7, 5  ;;  %v318_v33 = vperm.slane %v285_v7, 6  ;;  %v323_v38 = vperm.slane %v285_v7, 7 }
  0xbc   :  { %v292_v12 = vadd.f32 %v291_v8, %v699_v16  ;;  %v294_v13 = vadd.f32 %v293_v9, %v705_v24  ;;  %v299_v19 = vadd.f32 %v298_v10, %v701_v17  ;;  %v304_v26 = vadd.f32 %v303_v14, %v707_v25  ;;  %v638_v8 = vld [vmem:[#allocation14 + $0x5] ss:$0 sm:$0xff] }
  0xbd   :  { %v309_v32 = vadd.f32 %v308_v20, %v697_v15  ;;  %v314_v37 = vadd.f32 %v313_v27, %v703_v22  ;;  %v319_v44 = vadd.f32 %v318_v33, %v720_v42  ;;  %v324_v48 = vadd.f32 %v323_v38, %v717_v40 }
  0xbe   :  { %vm295_vm1 = vcmp.gt.f32.partialorder %v294_v13, %v292_v12  ;;  %v297_v18 = vmax.f32 %v292_v12, %v294_v13  ;;  %v78_v13 = vsel %vm23_vm0, %v613_v3, %v682_v0 }
  0xbf   :  { %v296_v21 = vsel %vm295_vm1, 1, %v640_v2 }
  0xc0   :  { %vm300_vm2 = vcmp.gt.f32.partialorder %v299_v19, %v297_v18  ;;  %v302_v23 = vmax.f32 %v297_v18, %v299_v19  ;;  %v335_v19 = vmul.f32 %v638_v8, %v78_v13 }
  0xc1   :  { %v301_v28 = vsel %vm300_vm2, 2, %v296_v21 }
  0xc2   :  { %vm305_vm3 = vcmp.gt.f32.partialorder %v304_v26, %v302_v23  ;;  %v307_v30 = vmax.f32 %v302_v23, %v304_v26 }
  0xc3   :  { %v306_v34 = vsel %vm305_vm3, 3, %v301_v28 }
  0xc4   :  { %vm310_vm4 = vcmp.gt.f32.partialorder %v309_v32, %v307_v30  ;;  %v312_v36 = vmax.f32 %v307_v30, %v309_v32 }
  0xc5   :  { %v311_v41 = vsel %vm310_vm4, 4, %v306_v34 }
  0xc6   :  { %vm315_vm5 = vcmp.gt.f32.partialorder %v314_v37, %v312_v36  ;;  %v317_v43 = vmax.f32 %v312_v36, %v314_v37 }
  0xc7   :  { %v316_v45 = vsel %vm315_vm5, 5, %v311_v41  ;;  %v614_v41 = vld [vmem:[%s938_s1 + $0x30] sm:$0xff] }
  0xc8   :  { %vm320_vm6 = vcmp.gt.f32.partialorder %v319_v44, %v317_v43  ;;  %v322_v47 = vmax.f32 %v317_v43, %v319_v44 }
  0xc9   :  { %v321_v49 = vsel %vm320_vm6, 6, %v316_v45 }
  0xca   :  { %vm325_vm7 = vcmp.gt.f32.partialorder %v324_v48, %v322_v47  ;;  %v327_v50 = vmax.f32 %v322_v47, %v324_v48 }
  0xcb   :  { %v776_v51 = vsel %vm325_vm7, 7, %v321_v49 }
  0xcc   :  { %v330_v52 = vadd.f32 %v327_v50, %v290_v46  ;;  %v639_v46 = vld [vmem:[#allocation14 + $0x6] ss:$0 sm:$0xff]  ;;  %v89_v50 = vsel %vm23_vm0, %v614_v41, %v682_v0 }
  0xce   :  { %v336_v53 = vperm.slane %v330_v52, 0  ;;  %v338_v54 = vperm.slane %v330_v52, 1  ;;  %v343_v55 = vperm.slane %v330_v52, 2  ;;  %v348_v58 = vperm.slane %v330_v52, 3 }
  0xcf   :  { %v353_v61 = vperm.slane %v330_v52, 4  ;;  %v358_v1 = vperm.slane %v330_v52, 5  ;;  %v363_v7 = vperm.slane %v330_v52, 6  ;;  %v368_v12 = vperm.slane %v330_v52, 7 }
  0xd0   :  { %v779_v56 = vadd.f32 %v336_v53, %v699_v16  ;;  %v782_v57 = vadd.f32 %v338_v54, %v705_v24  ;;  %v789_v60 = vadd.f32 %v343_v55, %v701_v17  ;;  %v796_v63 = vadd.f32 %v348_v58, %v707_v25 }
  0xd1   :  { %v806_v5 = vadd.f32 %v353_v61, %v697_v15  ;;  %v813_v10 = vadd.f32 %v358_v1, %v703_v22  ;;  %v823_v18 = vadd.f32 %v363_v7, %v720_v42  ;;  %v830_v21 = vadd.f32 %v368_v12, %v717_v40 }
  0xd2   :  { %v786_v59 = vmax.f32 %v779_v56, %v782_v57  ;;  %v380_v54 = vmul.f32 %v639_v46, %v89_v50  ;;  %vm340_vm9 = vcmp.gt.f32.partialorder %v782_v57, %v779_v56 }
  0xd4   :  { %v793_v62 = vmax.f32 %v786_v59, %v789_v60  ;;  %vm345_vm14 = vcmp.gt.f32.partialorder %v789_v60, %v786_v59 }
  0xd6   :  { %v803_v4 = vmax.f32 %v793_v62, %v796_v63  ;;  %vm350_vm4 = vcmp.gt.f32.partialorder %v796_v63, %v793_v62 }
  0xd8   :  { %v810_v9 = vmax.f32 %v803_v4, %v806_v5 }
  0xda   :  { %v820_v14 = vmax.f32 %v810_v9, %v813_v10 }
  0xdc   :  { %v827_v20 = vmax.f32 %v820_v14, %v823_v18 }
  0xde   :  { %v372_v23 = vmax.f32 %v827_v20, %v830_v21 }
  0xe0   :  { %v375_v26 = vadd.f32 %v372_v23, %v335_v19 }
  0xe2   :  { %v381_v27 = vperm.slane %v375_v26, 0  ;;  %v383_v28 = vperm.slane %v375_v26, 1  ;;  %v388_v29 = vperm.slane %v375_v26, 2  ;;  %v393_v33 = vperm.slane %v375_v26, 3 }
  0xe3   :  { %v398_v36 = vperm.slane %v375_v26, 4  ;;  %v403_v39 = vperm.slane %v375_v26, 5  ;;  %v408_v45 = vperm.slane %v375_v26, 6  ;;  %v413_v49 = vperm.slane %v375_v26, 7 }
  0xe4   :  { %v382_v30 = vadd.f32 %v381_v27, %v699_v16  ;;  %v384_v32 = vadd.f32 %v383_v28, %v705_v24  ;;  %v389_v35 = vadd.f32 %v388_v29, %v701_v17  ;;  %v394_v38 = vadd.f32 %v393_v33, %v707_v25 }
  0xe5   :  { %v399_v44 = vadd.f32 %v398_v36, %v697_v15  ;;  %v404_v48 = vadd.f32 %v403_v39, %v703_v22  ;;  %v849_v53 = vadd.f32 %v408_v45, %v720_v42  ;;  %v856_v58 = vadd.f32 %v413_v49, %v717_v40 }
  0xe6   :  { %v387_v34 = vmax.f32 %v382_v30, %v384_v32  ;;  %vm385_vm8 = vcmp.gt.f32.partialorder %v384_v32, %v382_v30 }
  0xe7   :  { %v386_v7 = vsel %vm385_vm8, 1, %v640_v2  ;;  %vm355_vm8 = vcmp.gt.f32.partialorder %v806_v5, %v803_v4 }
  0xe8   :  { %v392_v37 = vmax.f32 %v387_v34, %v389_v35  ;;  %vm390_vm0 = vcmp.gt.f32.partialorder %v389_v35, %v387_v34 }
  0xe9   :  { %v391_v27 = vsel %vm390_vm0, 2, %v386_v7 }
  0xea   :  { %v397_v43 = vmax.f32 %v392_v37, %v394_v38  ;;  %vm395_vm11 = vcmp.gt.f32.partialorder %v394_v38, %v392_v37 }
  0xec   :  { %v402_v47 = vmax.f32 %v397_v43, %v399_v44  ;;  %vm400_vm15 = vcmp.gt.f32.partialorder %v399_v44, %v397_v43 }
  0xee   :  { %v846_v52 = vmax.f32 %v402_v47, %v404_v48  ;;  %vm405_vm3 = vcmp.gt.f32.partialorder %v404_v48, %v402_v47 }
  0xf0   :  { %v853_v55 = vmax.f32 %v846_v52, %v849_v53  ;;  %vm410_vm6 = vcmp.gt.f32.partialorder %v849_v53, %v846_v52 }
  0xf2   :  { %v417_v61 = vmax.f32 %v853_v55, %v856_v58 }
  0xf4   :  { %v420_v1 = vadd.f32 %v417_v61, %v380_v54 }
  0xf6   :  { %v421_v11 = vperm.slane %v420_v1, 0  ;;  %v423_v0 = vperm.slane %v420_v1, 1  ;;  %v428_v3 = vperm.slane %v420_v1, 2  ;;  %v433_v13 = vperm.slane %v420_v1, 3 }
  0xf7   :  { %v438_v26 = vperm.slane %v420_v1, 4  ;;  %v448_v57 = vperm.slane %v420_v1, 6 }
  0xf8   :  { %v422_v8 = vadd.f32 %v421_v11, %v699_v16  ;;  %v424_v12 = vadd.f32 %v423_v0, %v705_v24  ;;  %v429_v23 = vadd.f32 %v428_v3, %v701_v17  ;;  %v434_v30 = vadd.f32 %v433_v13, %v707_v25 }
  0xf9   :  { %v443_v16 = vperm.slane %v420_v1, 5  ;;  %v341_v24 = vsel %vm340_vm9, 1, %v640_v2  ;;  %v439_v56 = vadd.f32 %v438_v26, %v697_v15  ;;  %v396_v17 = vsel %vm395_vm11, 3, %v391_v27 }
  0xfa   :  { %vm425_vm10 = vcmp.gt.f32.partialorder %v424_v12, %v422_v8  ;;  %v427_v19 = vmax.f32 %v422_v8, %v424_v12  ;;  %v453_v25 = vperm.slane %v420_v1, 7  ;;  %v449_v38 = vadd.f32 %v448_v57, %v720_v42 }
  0xfb   :  { %v426_v28 = vsel %vm425_vm10, 1, %v640_v2  ;;  %v444_v36 = vadd.f32 %v443_v16, %v703_v22  ;;  %v346_v39 = vsel %vm345_vm14, 2, %v341_v24  ;;  %v401_v41 = vsel %vm400_vm15, 4, %v396_v17 }
  0xfc   :  { %vm430_vm12 = vcmp.gt.f32.partialorder %v429_v23, %v427_v19  ;;  %v432_v29 = vmax.f32 %v427_v19, %v429_v23  ;;  %v454_v60 = vadd.f32 %v453_v25, %v717_v40  ;;  %v406_v44 = vsel %vm405_vm3, 5, %v401_v41 }
  0xfd   :  { %v431_v32 = vsel %vm430_vm12, 2, %v426_v28  ;;  %v351_v45 = vsel %vm350_vm4, 3, %v346_v39  ;;  %v411_v40 = vsel %vm410_vm6, 6, %v406_v44  ;;  %vm415_vm9 = vcmp.gt.f32.partialorder %v856_v58, %v853_v55 }
  0xfe   :  { %vm435_vm13 = vcmp.gt.f32.partialorder %v434_v30, %v432_v29  ;;  %v437_v33 = vmax.f32 %v432_v29, %v434_v30  ;;  %v356_v4 = vsel %vm355_vm8, 4, %v351_v45  ;;  %vm360_vm12 = vcmp.gt.f32.partialorder %v813_v10, %v810_v9 }
  0xff   :  { %v436_v34 = vsel %vm435_vm13, 3, %v431_v32  ;;  %v416_v53 = vsel %vm415_vm9, 7, %v411_v40  ;;  %v361_v55 = vsel %vm360_vm12, 5, %v356_v4  ;;  %v541_v41 = vrot.slane %v776_v51, 4 }
 0x100   :  { %vm440_vm1 = vcmp.gt.f32.partialorder %v439_v56, %v437_v33  ;;  %v442_v35 = vmax.f32 %v437_v33, %v439_v56  ;;  %v488_v0 = vrot.slane %v416_v53, 2  ;;  %v489_v3 = vrot.slane %v416_v53, 1 }
 0x101   :  { %v441_v37 = vsel %vm440_vm1, 4, %v436_v34  ;;  %vm365_vm1 = vcmp.gt.f32.partialorder %v823_v18, %v820_v14  ;;  %v492_v9 = vrot.slane %v416_v53, 3  ;;  %v495_v8 = vrot.slane %v416_v53, 4 }
 0x102   :  { %vm445_vm2 = vcmp.gt.f32.partialorder %v444_v36, %v442_v35  ;;  %v447_v2 = vmax.f32 %v442_v35, %v444_v36  ;;  %v366_v10 = vsel %vm365_vm1, 6, %v361_v55  ;;  %v498_v14 = vrot.slane %v416_v53, 5 }
 0x103   :  { %v446_v15 = vsel %vm445_vm2, 5, %v441_v37  ;;  %v501_v13 = vrot.slane %v416_v53, 6  ;;  %v504_v26 = vrot.slane %v416_v53, 7  ;;  %v534_v37 = vrot.slane %v776_v51, 2 }
 0x104   :  { %vm450_vm5 = vcmp.gt.f32.partialorder %v449_v38, %v447_v2  ;;  %v452_v59 = vmax.f32 %v447_v2, %v449_v38  ;;  %v535_v2 = vrot.slane %v776_v51, 1  ;;  %v538_v38 = vrot.slane %v776_v51, 3 }
 0x105   :  { %v451_v43 = vsel %vm450_vm5, 6, %v446_v15  ;;  %vm370_vm5 = vcmp.gt.f32.partialorder %v830_v21, %v827_v20  ;;  %v558_v40 = vrot.slane %v759_v6, 1  ;;  %v581_v55 = vrot.slane %v742_v31, 1 }
 0x106   :  { %vm455_vm7 = vcmp.gt.f32.partialorder %v454_v60, %v452_v59  ;;  %v457_v22 = vmax.f32 %v452_v59, %v454_v60  ;;  %v371_v19 = vsel %vm370_vm5, 7, %v366_v10  ;;  %v544_v59 = vrot.slane %v776_v51, 5 }
 0x107   :  { %v456_v42 = vsel %vm455_vm7, 7, %v451_v43  ;;  %v511_v30 = vrot.slane %v371_v19, 2  ;;  %v512_v16 = vrot.slane %v371_v19, 1  ;;  %v515_v20 = vrot.slane %v371_v19, 3 }
 0x108   :  { %460 = vst [vmem:[%s941_s4 - $0x7] sm:$0x80] %v457_v22  ;;  %vm464_vm0 = vcmp.eq.s32.totalorder %v456_v42, 1  ;;  %v465_v62 = vrot.slane %v456_v42, 2  ;;  %v466_v63 = vrot.slane %v456_v42, 1  ;;  %v469_v46 = vrot.slane %v456_v42, 3 }
 0x109   :  { %462 = vst [vmem:[%s942_s5 - $0x1] sm:$0x80] %v456_v42  ;;  %vm468_vm10 = vcmp.eq.s32.totalorder %v456_v42, 2  ;;  %v472_v48 = vrot.slane %v456_v42, 4  ;;  %vm471_vm11 = vcmp.eq.s32.totalorder %v456_v42, 3  ;;  %v475_v49 = vrot.slane %v456_v42, 5 }
 0x10a   :  { %v467_v47 = vsel %vm464_vm0, %v465_v62, %v466_v63  ;;  %vm474_vm13 = vcmp.eq.s32.totalorder %v456_v42, 4  ;;  %v478_v52 = vrot.slane %v456_v42, 6  ;;  %vm477_vm14 = vcmp.eq.s32.totalorder %v456_v42, 5 }
 0x10b   :  { %v470_v5 = vsel %vm468_vm10, %v469_v46, %v467_v47  ;;  %v481_v61 = vrot.slane %v456_v42, 7  ;;  %vm480_vm15 = vcmp.eq.s32.totalorder %v456_v42, 6  ;;  %vm483_vm2 = vcmp.eq.s32.totalorder %v456_v42, 7 }
 0x10c   :  { %v473_v50 = vsel %vm471_vm11, %v472_v48, %v470_v5  ;;  %v518_v24 = vrot.slane %v371_v19, 4  ;;  %v521_v33 = vrot.slane %v371_v19, 5  ;;  %v524_v57 = vrot.slane %v371_v19, 6 }
 0x10d   :  { %v476_v54 = vsel %vm474_vm13, %v475_v49, %v473_v50  ;;  %v527_v34 = vrot.slane %v371_v19, 7  ;;  %v547_v43 = vrot.slane %v776_v51, 6  ;;  %v550_v22 = vrot.slane %v776_v51, 7 }
 0x10e   :  { %v479_v1 = vsel %vm477_vm14, %v478_v52, %v476_v54  ;;  %v557_v63 = vrot.slane %v759_v6, 2  ;;  %v561_v46 = vrot.slane %v759_v6, 3  ;;  %v564_v48 = vrot.slane %v759_v6, 4 }
 0x10f   :  { %v482_v58 = vsel %vm480_vm15, %v481_v61, %v479_v1  ;;  %v567_v5 = vrot.slane %v759_v6, 5  ;;  %v570_v49 = vrot.slane %v759_v6, 6  ;;  %v573_v52 = vrot.slane %v759_v6, 7 }
 0x110   :  { %v484_v11 = vsel %vm483_vm2, %v456_v42, %v482_v58  ;;  %v580_v1 = vrot.slane %v742_v31, 2  ;;  %v584_v58 = vrot.slane %v742_v31, 3  ;;  %v593_v10 = vrot.slane %v742_v31, 6 }
 0x111   :  { %485 = vst [vmem:[%s942_s5 - $0x2] sm:$0x80] %v484_v11  ;;  %vm487_vm3 = vcmp.eq.s32.totalorder %v484_v11, 1  ;;  %vm491_vm4 = vcmp.eq.s32.totalorder %v484_v11, 2  ;;  %vm494_vm6 = vcmp.eq.s32.totalorder %v484_v11, 3  ;;  %vm497_vm7 = vcmp.eq.s32.totalorder %v484_v11, 4 }
 0x112   :  { %v490_v7 = vsel %vm487_vm3, %v488_v0, %v489_v3  ;;  %vm500_vm8 = vcmp.eq.s32.totalorder %v484_v11, 5  ;;  %vm503_vm0 = vcmp.eq.s32.totalorder %v484_v11, 6  ;;  %vm506_vm9 = vcmp.eq.s32.totalorder %v484_v11, 7 }
 0x113   :  { %v493_v12 = vsel %vm491_vm4, %v492_v9, %v490_v7  ;;  %v587_v0 = vrot.slane %v742_v31, 4  ;;  %v590_v9 = vrot.slane %v742_v31, 5 }
 0x114   :  { %v496_v18 = vsel %vm494_vm6, %v495_v8, %v493_v12  ;;  %v596_v8 = vrot.slane %v742_v31, 7 }
 0x115   :  { %v499_v23 = vsel %vm497_vm7, %v498_v14, %v496_v18 }
 0x116   :  { %v502_v27 = vsel %vm500_vm8, %v501_v13, %v499_v23 }
 0x117   :  { %v505_v28 = vsel %vm503_vm0, %v504_v26, %v502_v27 }
 0x118   :  { %v507_v29 = vsel %vm506_vm9, %v416_v53, %v505_v28 }
 0x119   :  { %508 = vst [vmem:[%s942_s5 - $0x3] sm:$0x80] %v507_v29  ;;  %vm510_vm10 = vcmp.eq.s32.totalorder %v507_v29, 1  ;;  %vm514_vm11 = vcmp.eq.s32.totalorder %v507_v29, 2  ;;  %vm517_vm12 = vcmp.eq.s32.totalorder %v507_v29, 3  ;;  %vm520_vm13 = vcmp.eq.s32.totalorder %v507_v29, 4 }
 0x11a   :  { %v513_v21 = vsel %vm510_vm10, %v511_v30, %v512_v16  ;;  %vm523_vm14 = vcmp.eq.s32.totalorder %v507_v29, 5  ;;  %vm526_vm15 = vcmp.eq.s32.totalorder %v507_v29, 6  ;;  %vm529_vm1 = vcmp.eq.s32.totalorder %v507_v29, 7 }
 0x11b   :  { %v516_v32 = vsel %vm514_vm11, %v515_v20, %v513_v21 }
 0x11c   :  { %v519_v56 = vsel %vm517_vm12, %v518_v24, %v516_v32 }
 0x11d   :  { %v522_v17 = vsel %vm520_vm13, %v521_v33, %v519_v56 }
 0x11e   :  { %v525_v35 = vsel %vm523_vm14, %v524_v57, %v522_v17 }
 0x11f   :  { %v528_v36 = vsel %vm526_vm15, %v527_v34, %v525_v35 }
 0x120   :  { %v530_v25 = vsel %vm529_vm1, %v371_v19, %v528_v36 }
 0x121   :  { %531 = vst [vmem:[%s942_s5 - $0x4] sm:$0x80] %v530_v25  ;;  %vm533_vm2 = vcmp.eq.s32.totalorder %v530_v25, 1  ;;  %vm537_vm3 = vcmp.eq.s32.totalorder %v530_v25, 2  ;;  %vm540_vm4 = vcmp.eq.s32.totalorder %v530_v25, 3  ;;  %vm543_vm5 = vcmp.eq.s32.totalorder %v530_v25, 4 }
 0x122   :  { %v536_v39 = vsel %vm533_vm2, %v534_v37, %v535_v2  ;;  %vm546_vm6 = vcmp.eq.s32.totalorder %v530_v25, 5  ;;  %vm549_vm7 = vcmp.eq.s32.totalorder %v530_v25, 6  ;;  %vm552_vm8 = vcmp.eq.s32.totalorder %v530_v25, 7 }
 0x123   :  { %v539_v15 = vsel %vm537_vm3, %v538_v38, %v536_v39 }
 0x124   :  { %v542_v60 = vsel %vm540_vm4, %v541_v41, %v539_v15 }
 0x125   :  { %v545_v44 = vsel %vm543_vm5, %v544_v59, %v542_v60 }
 0x126   :  { %v548_v45 = vsel %vm546_vm6, %v547_v43, %v545_v44 }
 0x127   :  { %v551_v42 = vsel %vm549_vm7, %v550_v22, %v548_v45 }
 0x128   :  { %v553_v62 = vsel %vm552_vm8, %v776_v51, %v551_v42 }
 0x129   :  { %554 = vst [vmem:[%s942_s5 - $0x5] sm:$0x80] %v553_v62  ;;  %vm556_vm0 = vcmp.eq.s32.totalorder %v553_v62, 1  ;;  %vm560_vm9 = vcmp.eq.s32.totalorder %v553_v62, 2  ;;  %vm563_vm10 = vcmp.eq.s32.totalorder %v553_v62, 3  ;;  %vm566_vm11 = vcmp.eq.s32.totalorder %v553_v62, 4 }
 0x12a   :  { %v559_v47 = vsel %vm556_vm0, %v557_v63, %v558_v40  ;;  %vm569_vm12 = vcmp.eq.s32.totalorder %v553_v62, 5  ;;  %vm572_vm13 = vcmp.eq.s32.totalorder %v553_v62, 6  ;;  %vm575_vm14 = vcmp.eq.s32.totalorder %v553_v62, 7 }
 0x12b   :  { %v562_v4 = vsel %vm560_vm9, %v561_v46, %v559_v47 }
 0x12c   :  { %v565_v51 = vsel %vm563_vm10, %v564_v48, %v562_v4 }
 0x12d   :  { %v568_v50 = vsel %vm566_vm11, %v567_v5, %v565_v51 }
 0x12e   :  { %v571_v53 = vsel %vm569_vm12, %v570_v49, %v568_v50 }
 0x12f   :  { %v574_v54 = vsel %vm572_vm13, %v573_v52, %v571_v53 }
 0x130   :  { %v576_v61 = vsel %vm575_vm14, %v759_v6, %v574_v54 }
 0x131   :  { %577 = vst [vmem:[%s942_s5 - $0x6] sm:$0x80] %v576_v61  ;;  %vm579_vm15 = vcmp.eq.s32.totalorder %v576_v61, 1  ;;  %vm583_vm1 = vcmp.eq.s32.totalorder %v576_v61, 2  ;;  %vm586_vm2 = vcmp.eq.s32.totalorder %v576_v61, 3  ;;  %vm589_vm3 = vcmp.eq.s32.totalorder %v576_v61, 4 }
 0x132   :  { %v582_v11 = vsel %vm579_vm15, %v580_v1, %v581_v55  ;;  %vm592_vm4 = vcmp.eq.s32.totalorder %v576_v61, 5  ;;  %vm595_vm5 = vcmp.eq.s32.totalorder %v576_v61, 6  ;;  %vm598_vm6 = vcmp.eq.s32.totalorder %v576_v61, 7 }
 0x133   :  { %v585_v3 = vsel %vm583_vm1, %v584_v58, %v582_v11 }
 0x134   :  { %v588_v6 = vsel %vm586_vm2, %v587_v0, %v585_v3 }
 0x135   :  { %v591_v7 = vsel %vm589_vm3, %v590_v9, %v588_v6 }
 0x136   :  { %v594_v12 = vsel %vm592_vm4, %v593_v10, %v591_v7 }
 0x137   :  { %v597_v14 = vsel %vm595_vm5, %v596_v8, %v594_v12 }
 0x138   :  { %v599_v18 = vsel %vm598_vm6, %v742_v31, %v597_v14 }
 0x139   :  { %600 = vst [vmem:[%s942_s5 - $0x7] sm:$0x80] %v599_v18 }

</bundles_post_ra>
